<compile_context>
chip_gen: v5e
topology: v5e:2x2
jax: 0.10.0
libtpu: 0.0.40
codegen_flags: <defaults>
</compile_context>

<pallas_src>
import functools

import numpy as np
import jax
import jax.numpy as jnp
from jax import lax
from jax.experimental import pallas as pl
from jax.experimental.pallas import tpu as pltpu

PATCH = 4            # stand-in encoder downsamples H, W by 4
DEC_DIM = 96         # decoder_dim[-1] (logical feature width)
FEAT = 128           # lane-padded feature width (96 -> 128)
HID = 64             # hidden width of every head
NUM_LEVEL = 5
NUM_GRADE = 3
NUM_CH = NUM_LEVEL + NUM_GRADE   # 8: mask rows 0..4 = level, 5..7 = grade
XG_W = 8             # packed [x, y, grade0..2, 0, 0, 0] lanes
PAD8 = 8             # lane padding for tiny logit outputs
VMEM_LIMIT = 48 * 1024 * 1024    # explicit scoped-VMEM budget (v7x: 64 MiB phys)


def _pick_tile(n):
    """Largest row-tile that divides n (keeps blocks (8,128)-legal)."""
    for cand in (2048, 1024, 512, 256, 128, 64, 32, 16, 8):
        if n % cand == 0:
            return cand
    return n   # TODO(synk): pad ragged hw to a multiple of 8 and mask the tail


# ----------------------------------------------------------------------------
# Kernel A: stand-in encoder (relu(x@w+b)) + fused global-avg-pool + z head
# ----------------------------------------------------------------------------
def _encoder_z_kernel(inv_hw, x_ref, w_ref, b_ref, zw1_ref, zs1_ref, zt1_ref,
                      zw2_ref, zb2_ref, last_ref, zlog_ref, zacc_ref):
    j = pl.program_id(1)

    # patch embedding: f32 accumulation, bf16 lane-dense store
    y = jnp.dot(x_ref[0], w_ref[...], preferred_element_type=jnp.float32)
    y = jnp.maximum(y + b_ref[...], 0.0)                       # (thw, 128) f32
    last_ref[0] = y.astype(last_ref.dtype)                     # bf16

    # running per-slice sum for the global average pool (f32 accumulator)
    psum = jnp.sum(y, axis=0, keepdims=True)                   # (1, 128)

    @pl.when(j == 0)
    def _():
        zacc_ref[...] = psum

    @pl.when(j > 0)
    def _():
        zacc_ref[...] += psum

    # fused z head (Linear -> folded BN -> ReLU -> Linear) on the last hw tile
    @pl.when(j == pl.num_programs(1) - 1)
    def _():
        zpool = (zacc_ref[...] * inv_hw).astype(jnp.bfloat16)  # (1, 128)
        hz = jnp.dot(zpool, zw1_ref[...], preferred_element_type=jnp.float32)
        hz = jnp.maximum(hz * zs1_ref[...] + zt1_ref[...], 0.0)
        zl = jnp.dot(hz.astype(jnp.bfloat16), zw2_ref[...],
                     preferred_element_type=jnp.float32) + zb2_ref[...]
        zlog_ref[0] = zl                                        # (1, 8)


def encoder_zhead(patches, enc_w, enc_b, zhp):
    """patches: (B, hw, 48) bf16 -> last (B, hw, 128) bf16, z logits (B,1,8)."""
    B, hw, k = patches.shape
    feat = enc_w.shape[1]
    thw = _pick_tile(hw)
    kern = functools.partial(_encoder_z_kernel, 1.0 / hw)
    return pl.pallas_call(
        kern,
        out_shape=(jax.ShapeDtypeStruct((B, hw, feat), jnp.bfloat16),
                   jax.ShapeDtypeStruct((B, 1, PAD8), jnp.float32)),
        grid=(B, hw // thw),
        in_specs=[
            pl.BlockSpec((1, thw, k), lambda i, j: (i, j, 0)),
            pl.BlockSpec((k, feat), lambda i, j: (0, 0)),
            pl.BlockSpec((1, feat), lambda i, j: (0, 0)),
            pl.BlockSpec((feat, HID), lambda i, j: (0, 0)),
            pl.BlockSpec((1, HID), lambda i, j: (0, 0)),
            pl.BlockSpec((1, HID), lambda i, j: (0, 0)),
            pl.BlockSpec((HID, PAD8), lambda i, j: (0, 0)),
            pl.BlockSpec((1, PAD8), lambda i, j: (0, 0)),
        ],
        out_specs=(
            pl.BlockSpec((1, thw, feat), lambda i, j: (i, j, 0)),
            pl.BlockSpec((1, 1, PAD8), lambda i, j: (i, 0, 0)),
        ),
        scratch_shapes=[pltpu.VMEM((1, feat), jnp.float32)],
        compiler_params=pltpu.CompilerParams(
            dimension_semantics=("parallel", "arbitrary"),
            vmem_limit_bytes=VMEM_LIMIT),
    )(patches, enc_w, enc_b.reshape(1, feat),
      zhp["w1"], zhp["s1"], zhp["t1"], zhp["w2"], zhp["b2"])


# ----------------------------------------------------------------------------
# Kernel B: z-window pooling + level/grade heads + softmaxes + heatmaps
# ----------------------------------------------------------------------------
def _heads_window_kernel(sidx_ref, wgt_ref, last_ref, pos_ref, w1_ref, s1_ref,
                         t1_ref, w2t_ref, b2_ref, mask_ref, xg_ref, acc_ref):
    i = pl.program_id(0)
    s = pl.program_id(1)

    # z-window mean pooling: weighted accumulate of the prefetch-selected slice
    wgt = wgt_ref[i, s]                                         # f32 SMEM scalar
    x = last_ref[0].astype(jnp.float32) * wgt                   # (hw, 128)

    @pl.when(s == 0)
    def _():
        acc_ref[...] = x

    @pl.when(s > 0)
    def _():
        acc_ref[...] += x

    # heads + heatmaps only on the final window step
    @pl.when(s == pl.num_programs(1) - 1)
    def _():
        pooled = acc_ref[...].astype(jnp.bfloat16)              # (hw, 128)

        # first 1x1 conv of BOTH heads as ONE (128,128) matmul; folded BN; SiLU
        h1 = jnp.dot(pooled, w1_ref[...], preferred_element_type=jnp.float32)
        h1 = h1 * s1_ref[...] + t1_ref[...]
        h1 = (h1 * jax.nn.sigmoid(h1)).astype(jnp.bfloat16)     # (hw, 128)

        # second (block-diagonal, transposed) 1x1 conv -> channel-first logits
        logits = lax.dot_general(w2t_ref[...], h1, (((1,), (1,)), ((), ())),
                                 preferred_element_type=jnp.float32)
        logits = logits + b2_ref[...]                           # (8, hw)
        ll = logits[:NUM_LEVEL, :]                              # (5, hw)
        gl = logits[NUM_LEVEL:, :]                              # (3, hw)

        # level: softmax over spatial (lanes); grade: softmax over channel
        lm = jnp.exp(ll - jnp.max(ll, axis=-1, keepdims=True))
        lm = lm * pl.reciprocal(jnp.sum(lm, axis=-1, keepdims=True), approx=True)
        gm = jnp.exp(gl - jnp.max(gl, axis=0, keepdims=True))
        gm = gm * pl.reciprocal(jnp.sum(gm, axis=0, keepdims=True), approx=True)

        # single unmasked (8, hw) store: rows 0..4 = level mask, 5..7 = grade
        mask_ref[0] = jnp.concatenate([lm, gm], axis=0)

        # heatmap_to_coord (lane reductions) + heatmap_to_grade (5x3 MXU dot)
        pos_x = pos_ref[0:1, :]
        pos_y = pos_ref[1:2, :]
        xs = jnp.sum(lm * pos_x, axis=-1, keepdims=True)        # (5, 1)
        ys = jnp.sum(lm * pos_y, axis=-1, keepdims=True)        # (5, 1)
        gr = lax.dot_general(lm, gm, (((1,), (1,)), ((), ())),
                             preferred_element_type=jnp.float32)  # (5, 3)
        pad = jnp.zeros((NUM_LEVEL, XG_W - 2 - NUM_GRADE), jnp.float32)
        xg_ref[0] = jnp.concatenate([xs, ys, gr, pad], axis=-1)  # one (5,8) store


def heads_window(slice_idx, wgt, last, pos, p, ni, dmax):
    """slice_idx/wgt: (ni, dmax) scalar-prefetch tables; last: (B, hw, 128) bf16;
    pos: (2, hw) f32 -> masks (ni, 8, hw) f32, xy|grade (ni, 5, 8) f32."""
    B, hw, feat = last.shape
    # TODO(synk): tile hw (two-pass spatial softmax) if hw grows past the v7x
    #             64 MiB VMEM budget; current per-image working set is ~4*hw KB.
    grid_spec = pltpu.PrefetchScalarGridSpec(
        num_scalar_prefetch=2,
        grid=(ni, dmax),
        in_specs=[
            pl.BlockSpec((1, hw, feat),
                         lambda i, s, sidx, wgt: (sidx[i, s], 0, 0)),
            pl.BlockSpec((2, hw), lambda i, s, sidx, wgt: (0, 0)),
            pl.BlockSpec((feat, 2 * HID), lambda i, s, sidx, wgt: (0, 0)),
            pl.BlockSpec((1, 2 * HID), lambda i, s, sidx, wgt: (0, 0)),
            pl.BlockSpec((1, 2 * HID), lambda i, s, sidx, wgt: (0, 0)),
            pl.BlockSpec((NUM_CH, 2 * HID), lambda i, s, sidx, wgt: (0, 0)),
            pl.BlockSpec((NUM_CH, 1), lambda i, s, sidx, wgt: (0, 0)),
        ],
        out_specs=(
            pl.BlockSpec((1, NUM_CH, hw), lambda i, s, sidx, wgt: (i, 0, 0)),
            pl.BlockSpec((1, NUM_LEVEL, XG_W), lambda i, s, sidx, wgt: (i, 0, 0)),
        ),
        scratch_shapes=[pltpu.VMEM((hw, feat), jnp.float32)],
    )
    return pl.pallas_call(
        _heads_window_kernel,
        out_shape=(
            jax.ShapeDtypeStruct((ni, NUM_CH, hw), jnp.float32),
            jax.ShapeDtypeStruct((ni, NUM_LEVEL, XG_W), jnp.float32),
        ),
        grid_spec=grid_spec,
        compiler_params=pltpu.CompilerParams(
            dimension_semantics=("parallel", "arbitrary"),
            vmem_limit_bytes=VMEM_LIMIT),
    )(slice_idx, wgt, last, pos, p["w1"], p["s1"], p["t1"], p["w2t"], p["b2"])


# ----------------------------------------------------------------------------
# Losses (JAX glue; exact re-implementations of the torch helpers)
# ----------------------------------------------------------------------------
def f_grade_loss(grade, truth):
    eps = 1e-5
    wvec = jnp.array([1.0, 2.0, 4.0], jnp.float32)
    t = truth.reshape(-1)
    g = jnp.clip(grade.reshape(-1, 3), eps, 1.0 - eps)
    valid = (t != -1)
    tt = jnp.where(valid, t, 0)
    logp = jnp.log(g)[jnp.arange(t.shape[0]), tt]
    wt = wvec[tt] * valid.astype(jnp.float32)
    return -(wt * logp).sum() / jnp.maximum(wt.sum(), 1e-12)


def f_level_mask_loss(level_mask, truth):
    eps = 1e-8
    ni, nl, h, w = level_mask.shape
    p = jnp.clip(truth.reshape(-1, h * w), eps, 1.0 - eps)
    q = jnp.clip(level_mask.reshape(-1, h * w), eps, 1.0 - eps)
    m = jnp.log(0.5 * (p + q))
    n = p.shape[0]
    kl_pm = jnp.sum(p * (jnp.log(p) - m)) / n
    kl_qm = jnp.sum(q * (jnp.log(q) - m)) / n
    return 0.5 * (kl_pm + kl_qm)


def f_z_mask_loss(z_mask, xyz, offsets):
    eps = 1e-8
    t = xyz[:, :, 2].astype(jnp.int32)                   # (ni, 5)
    valid = (t != -1)
    tt = jnp.where(valid, t, 0)
    g = jnp.clip(z_mask, eps, 1.0 - eps)
    logp = jnp.log(g)[offsets[:, None] + tt, jnp.arange(NUM_LEVEL)[None, :]]
    vf = valid.astype(jnp.float32)
    per_img = -(logp * vf).sum(axis=1) / jnp.maximum(vf.sum(axis=1), 1.0)
    return per_img.mean()


# ----------------------------------------------------------------------------
# Parameters
# ----------------------------------------------------------------------------
def make_head_params(key, cin, ch, cout):
    k = jax.random.split(key, 8)
    w1 = 0.1 * jax.random.normal(k[0], (cin, ch), jnp.float32)
    b1 = 0.1 * jax.random.normal(k[1], (ch,), jnp.float32)
    gamma = 1.0 + 0.1 * jax.random.normal(k[2], (ch,), jnp.float32)
    beta = 0.1 * jax.random.normal(k[3], (ch,), jnp.float32)
    rmean = 0.1 * jax.random.normal(k[4], (ch,), jnp.float32)
    rvar = 0.5 + jax.random.uniform(k[5], (ch,), jnp.float32)
    w2 = 0.1 * jax.random.normal(k[6], (ch, cout), jnp.float32)
    b2 = 0.1 * jax.random.normal(k[7], (cout,), jnp.float32)
    s1 = gamma / jnp.sqrt(rvar + 1e-5)                   # folded eval-mode BN
    t1 = (b1 - rmean) * s1 + beta
    return dict(w1=w1, s1=s1, t1=t1, w2=w2, b2=b2)


def _pad_rows(x, rows):
    return jnp.pad(x, ((0, rows - x.shape[0]), (0, 0)))


def init_params(key):
    k_enc, k_z, k_l, k_g = jax.random.split(key, 4)
    ke = jax.random.split(k_enc, 2)
    enc_w = 0.1 * jax.random.normal(ke[0], (3 * PATCH * PATCH, DEC_DIM), jnp.float32)
    enc_b = 0.1 * jax.random.normal(ke[1], (DEC_DIM,), jnp.float32)
    enc_w = jnp.pad(enc_w, ((0, 0), (0, FEAT - DEC_DIM)))      # lane-pad 96->128
    enc_b = jnp.pad(enc_b, (0, FEAT - DEC_DIM))

    zp = make_head_params(k_z, DEC_DIM, HID, NUM_LEVEL)
    lvl = make_head_params(k_l, DEC_DIM, HID, NUM_LEVEL)
    grd = make_head_params(k_g, DEC_DIM, HID, NUM_GRADE)

    # z head (padded input channels are zero-weighted; padded logits are zero)
    z_head_p = dict(
        w1=_pad_rows(zp["w1"], FEAT).astype(jnp.bfloat16),          # (128, 64)
        s1=zp["s1"].reshape(1, HID),
        t1=zp["t1"].reshape(1, HID),
        w2=jnp.pad(zp["w2"], ((0, 0), (0, PAD8 - NUM_LEVEL))).astype(jnp.bfloat16),
        b2=jnp.pad(zp["b2"], (0, PAD8 - NUM_LEVEL)).reshape(1, PAD8),
    )

    # combined level|grade head: hidden = 64 + 64, block-diagonal second conv
    w1c = jnp.concatenate([lvl["w1"], grd["w1"]], axis=1)           # (96, 128)
    w1c = _pad_rows(w1c, FEAT)                                      # (128, 128)
    s1c = jnp.concatenate([lvl["s1"], grd["s1"]]).reshape(1, 2 * HID)
    t1c = jnp.concatenate([lvl["t1"], grd["t1"]]).reshape(1, 2 * HID)
    w2t = jnp.zeros((NUM_CH, 2 * HID), jnp.float32)
    w2t = w2t.at[:NUM_LEVEL, :HID].set(lvl["w2"].T)
    w2t = w2t.at[NUM_LEVEL:, HID:].set(grd["w2"].T)
    b2c = jnp.concatenate([lvl["b2"], grd["b2"]]).reshape(NUM_CH, 1)
    lg_head_p = dict(w1=w1c.astype(jnp.bfloat16), s1=s1c, t1=t1c,
                     w2t=w2t.astype(jnp.bfloat16), b2=b2c)

    return {
        "enc_w": enc_w.astype(jnp.bfloat16),
        "enc_b": enc_b,
        "z_head": z_head_p,
        "lg_head": lg_head_p,
    }


# ----------------------------------------------------------------------------
# Forward pass (Net.forward)
# ----------------------------------------------------------------------------
@functools.partial(jax.jit, static_argnums=(5,))
def _net_forward_jit(params, image, xyz, level_mask_truth, grade_truth, D):
    ni = len(D)
    B, H, W = image.shape
    h, w = H // PATCH, W // PATCH
    hw = h * w
    dmax = min(7, max(D))          # z window is at most 7 slices wide

    # --- static segment bookkeeping (D is a static python tuple) ---
    seg_np = np.repeat(np.arange(ni), D)
    off_np = np.concatenate([[0], np.cumsum(D)[:-1]]).astype(np.int32)
    seg = jnp.asarray(seg_np, jnp.int32)
    offsets = jnp.asarray(off_np, jnp.int32)
    local_idx = jnp.asarray(np.arange(B) - off_np[seg_np], jnp.float32)
    d_len = jnp.asarray(np.asarray(D), jnp.float32)
    oneh = jnp.asarray(seg_np[None, :] == np.arange(ni)[:, None], jnp.float32)
    # exact position grids as host constants (matches torch meshgrid 'xy')
    pos = jnp.asarray(np.stack(
        [np.tile(np.arange(w, dtype=np.float32), h),
         np.repeat(np.arange(h, dtype=np.float32), w)], axis=0))    # (2, hw)

    # --- preprocess + patch extraction (stand-in encoder/decoder input) ---
    x = (image.astype(jnp.float32) / 255.0 - 0.5) / 0.5
    x3 = jnp.broadcast_to(x[..., None], (B, H, W, 3))
    patches = x3.reshape(B, h, PATCH, w, PATCH, 3).transpose(0, 1, 3, 2, 4, 5)
    patches = patches.reshape(B, hw, PATCH * PATCH * 3).astype(jnp.bfloat16)

    # --- Kernel A: `last` (bf16) + fused global-avg-pool + z head logits ---
    last, zlog = encoder_zhead(patches, params["enc_w"], params["enc_b"],
                               params["z_head"])
    z_logits = zlog[:, 0, :NUM_LEVEL]                                 # (B, 5)

    # --- per-series softmax over the slice axis (dense segment formulation) ---
    seg_sel = oneh[:, :, None] > 0.5                                  # (ni, B, 1)
    zmax = jnp.max(jnp.where(seg_sel, z_logits[None], -jnp.inf), axis=1)
    ze = jnp.exp(z_logits - zmax[seg])
    zden = oneh @ ze                                                  # (ni, 5)
    z_mask = ze / zden[seg]                                           # (B, 5)

    # --- per-series z-window [zi-3, zi+4) -> scalar-prefetch tables ---
    zc = oneh @ (z_mask.mean(axis=1) * local_idx)                     # (ni,)
    zi = jnp.round(zc)
    lower = jnp.maximum(0.0, zi - 3.0)
    upper = jnp.minimum(d_len, zi + 4.0)
    cnt = upper - lower                                               # >= 1
    srange = jnp.arange(dmax, dtype=jnp.float32)[None, :]             # (1, dmax)
    local = jnp.minimum(lower[:, None] + srange, upper[:, None] - 1.0)
    slice_idx = offsets[:, None] + local.astype(jnp.int32)            # (ni, dmax)
    wgt = (srange < cnt[:, None]).astype(jnp.float32) / cnt[:, None]  # (ni, dmax)

    # --- Kernel B: window pooling + heads + softmaxes + heatmaps ---
    masks, xg = heads_window(slice_idx, wgt, last, pos,
                             params["lg_head"], ni, dmax)
    level_mask = masks[:, :NUM_LEVEL].reshape(ni, NUM_LEVEL, h, w)    # NCHW
    grade_mask = masks[:, NUM_LEVEL:].reshape(ni, NUM_GRADE, h, w)    # NCHW
    xy = xg[:, :, :2]                                                 # (ni, 5, 2)
    grade = xg[:, :, 2:2 + NUM_GRADE]                                 # (ni, 5, 3)

    output = {}

    # ---- losses ----
    xyz = xyz.astype(jnp.float32)
    grade_truth = grade_truth.astype(jnp.int32)
    output["z_mask_loss"] = f_z_mask_loss(z_mask, xyz, offsets)
    output["xy_loss"] = jnp.mean((xy - xyz[..., :2]) ** 2)
    output["level_mask_loss"] = f_level_mask_loss(
        level_mask, level_mask_truth.astype(jnp.float32))
    grade_loss = f_grade_loss(grade, grade_truth)
    xyz_flat = xyz.reshape(-1, 3)
    ii = jnp.repeat(jnp.arange(ni), NUM_LEVEL)
    for dx, dy in [(-1, 0), (0, -1), (0, 0), (0, 1), (1, 0)]:
        xx = jnp.clip(jnp.round(xyz_flat[:, 0] + dx * 0.5).astype(jnp.int32), 0, w - 1)
        yy = jnp.clip(jnp.round(xyz_flat[:, 1] + dy * 0.5).astype(jnp.int32), 0, h - 1)
        grade_from_truth = grade_mask[ii, :, yy, xx]                  # (ni*5, 3)
        wloss = 0.5 if (dx == 0 and dy == 0) else 0.125
        grade_loss = grade_loss + wloss * f_grade_loss(grade_from_truth, grade_truth)
    output["grade_loss"] = grade_loss

    # ---- infer ----
    output["level_mask"] = level_mask
    output["grade"] = grade
    output["z_mask"] = z_mask
    output["xy"] = xy
    masked_zm = jnp.where(seg_sel, z_mask[None], -jnp.inf)            # (ni, B, 5)
    output["z"] = jnp.argmax(masked_zm, axis=1) - offsets[:, None]
    return output


def net_forward(params, batch):
    return _net_forward_jit(params, batch["image"], batch["xyz"],
                            batch["level_mask"], batch["grade"],
                            tuple(int(d) for d in batch["D"]))


# ----------------------------------------------------------------------------
if __name__ == "__main__":
    key = jax.random.PRNGKey(0)
    kp, kd = jax.random.split(key)
    params = init_params(kp)

    D = [3, 3]                     # slices per image series (static python list)
    num_image = len(D)
    B = sum(D)
    H = W = 32
    h = w = H // PATCH

    ks = jax.random.split(kd, 5)
    image = jax.random.randint(ks[0], (B, H, W), 0, 256).astype(jnp.float32)
    xy_truth = jax.random.uniform(ks[1], (num_image, NUM_LEVEL, 2),
                                  minval=0.0, maxval=float(w - 1))
    z_truth = jax.random.randint(ks[2], (num_image, NUM_LEVEL, 1),
                                 0, min(D)).astype(jnp.float32)
    xyz = jnp.concatenate([xy_truth, z_truth], axis=-1)
    level_mask_truth = jax.nn.softmax(
        jax.random.normal(ks[3], (num_image, NUM_LEVEL, h * w)), axis=-1
    ).reshape(num_image, NUM_LEVEL, h, w)
    grade_truth = jax.random.randint(ks[4], (num_image, NUM_LEVEL), 0, 3)

    batch = dict(image=image, D=D, xyz=xyz,
                 level_mask=level_mask_truth, grade=grade_truth)

    out = net_forward(params, batch)
    out = jax.tree_util.tree_map(jax.block_until_ready, out)

    for k in ["z_mask_loss", "xy_loss", "level_mask_loss", "grade_loss"]:
        assert bool(jnp.isfinite(out[k])), f"non-finite {k}"
    assert out["level_mask"].shape == (num_image, NUM_LEVEL, h, w)
    assert out["grade"].shape == (num_image, NUM_LEVEL, NUM_GRADE)
    assert out["z_mask"].shape == (B, NUM_LEVEL)
    assert out["xy"].shape == (num_image, NUM_LEVEL, 2)
    assert out["z"].shape == (num_image, NUM_LEVEL)

    print("KERNEL_OK")
</pallas_src>

<mosaic_0001>
module attributes {stable_mosaic.version = 11 : i64} {
  func.func @_encoder_z_kernel(%arg0: i32, %arg1: i32, %arg2: memref<1x64x48xbf16, #tpu.memory_space<vmem>>, %arg3: memref<48x128xbf16, #tpu.memory_space<vmem>>, %arg4: memref<1x128xf32, #tpu.memory_space<vmem>>, %arg5: memref<128x64xbf16, #tpu.memory_space<vmem>>, %arg6: memref<1x64xf32, #tpu.memory_space<vmem>>, %arg7: memref<1x64xf32, #tpu.memory_space<vmem>>, %arg8: memref<64x8xbf16, #tpu.memory_space<vmem>>, %arg9: memref<1x8xf32, #tpu.memory_space<vmem>>, %arg10: memref<1x64x128xbf16, #tpu.memory_space<vmem>>, %arg11: memref<1x1x8xf32, #tpu.memory_space<vmem>>, %arg12: memref<1x128xf32, #tpu.memory_space<vmem>>) attributes {dimension_semantics = [#tpu.dimension_semantics<parallel>, #tpu.dimension_semantics<arbitrary>], iteration_bounds = array<i64: 6, 1>, scalar_prefetch = 0 : i64, scratch_operands = 1 : i64, tpu.core_type = #tpu.core_type<tc>, window_params = [{transform_indices = @transform_0, window_bounds = array<i64: 1, 64, 48>}, {pipeline_mode = #tpu.pipeline_mode<synchronous>, transform_indices = @transform_1, window_bounds = array<i64: 48, 128>}, {pipeline_mode = #tpu.pipeline_mode<synchronous>, transform_indices = @transform_2, window_bounds = array<i64: 1, 128>}, {pipeline_mode = #tpu.pipeline_mode<synchronous>, transform_indices = @transform_3, window_bounds = array<i64: 128, 64>}, {pipeline_mode = #tpu.pipeline_mode<synchronous>, transform_indices = @transform_4, window_bounds = array<i64: 1, 64>}, {pipeline_mode = #tpu.pipeline_mode<synchronous>, transform_indices = @transform_5, window_bounds = array<i64: 1, 64>}, {pipeline_mode = #tpu.pipeline_mode<synchronous>, transform_indices = @transform_6, window_bounds = array<i64: 64, 8>}, {pipeline_mode = #tpu.pipeline_mode<synchronous>, transform_indices = @transform_7, window_bounds = array<i64: 1, 8>}, {transform_indices = @transform_8, window_bounds = array<i64: 1, 64, 128>}, {transform_indices = @transform_9, window_bounds = array<i64: 1, 1, 8>}]} {
    %c0 = arith.constant 0 : index
    %c0_0 = arith.constant 0 : index
    %c0_1 = arith.constant 0 : index
    %0 = vector.load %arg2[%c0, %c0_0, %c0_1] : memref<1x64x48xbf16, #tpu.memory_space<vmem>>, vector<1x64x48xbf16>
    %1 = vector.shape_cast %0 : vector<1x64x48xbf16> to vector<64x48xbf16>
    %c0_2 = arith.constant 0 : index
    %c0_3 = arith.constant 0 : index
    %2 = vector.load %arg3[%c0_2, %c0_3] : memref<48x128xbf16, #tpu.memory_space<vmem>>, vector<48x128xbf16>
    %cst = arith.constant dense<0.000000e+00> : vector<64x128xf32>
    %3 = tpu.matmul %1, %2, %cst {dimension_numbers = #tpu.dot_dimension_numbers<[1], [0], [0], [1], [0, 0, 1, 1], [], []>} : vector<64x48xbf16>, vector<48x128xbf16>, vector<64x128xf32> -> vector<64x128xf32>
    %c0_4 = arith.constant 0 : index
    %c0_5 = arith.constant 0 : index
    %4 = vector.load %arg4[%c0_4, %c0_5] : memref<1x128xf32, #tpu.memory_space<vmem>>, vector<1x128xf32>
    %5 = vector.broadcast %4 : vector<1x128xf32> to vector<64x128xf32>
    %6 = arith.addf %3, %5 : vector<64x128xf32>
    %cst_6 = arith.constant 0.000000e+00 : f32
    %7 = vector.broadcast %cst_6 : f32 to vector<64x128xf32>
    %8 = arith.maximumf %6, %7 : vector<64x128xf32>
    %9 = arith.truncf %8 : vector<64x128xf32> to vector<64x128xbf16>
    %c0_7 = arith.constant 0 : index
    %c0_8 = arith.constant 0 : index
    %c0_9 = arith.constant 0 : index
    %10 = vector.load %arg10[%c0_7, %c0_8, %c0_9] : memref<1x64x128xbf16, #tpu.memory_space<vmem>>, vector<1x64x128xbf16>
    %11 = vector.shape_cast %10 : vector<1x64x128xbf16> to vector<64x128xbf16>
    %12 = vector.shape_cast %9 : vector<64x128xbf16> to vector<1x64x128xbf16>
    tpu.vector_store %arg10[%c0_7, %c0_8, %c0_9], %12 {strides = array<i32>} : memref<1x64x128xbf16, #tpu.memory_space<vmem>>, vector<1x64x128xbf16>,
    %cst_10 = arith.constant dense<0.000000e+00> : vector<128xf32>
    %13 = vector.multi_reduction <add>, %8, %cst_10 [0] : vector<64x128xf32> to vector<128xf32>
    %14 = vector.shape_cast %13 : vector<128xf32> to vector<1x128xf32>
    %c0_i32 = arith.constant 0 : i32
    %15 = arith.cmpi eq, %arg1, %c0_i32 : i32
    %16 = arith.extui %15 : i1 to i32
    %c0_i32_11 = arith.constant 0 : i32
    %17 = arith.cmpi ne, %16, %c0_i32_11 : i32
    scf.if %17 {
      %c0_16 = arith.constant 0 : index
      %c0_17 = arith.constant 0 : index
      %24 = vector.load %arg12[%c0_16, %c0_17] : memref<1x128xf32, #tpu.memory_space<vmem>>, vector<1x128xf32>
      tpu.vector_store %arg12[%c0_16, %c0_17], %14 {strides = array<i32>} : memref<1x128xf32, #tpu.memory_space<vmem>>, vector<1x128xf32>,
    } else {
    }
    %c0_i32_12 = arith.constant 0 : i32
    %18 = arith.cmpi sgt, %arg1, %c0_i32_12 : i32
    %19 = arith.extui %18 : i1 to i32
    %c0_i32_13 = arith.constant 0 : i32
    %20 = arith.cmpi ne, %19, %c0_i32_13 : i32
    scf.if %20 {
      %c0_16 = arith.constant 0 : index
      %c0_17 = arith.constant 0 : index
      %24 = vector.load %arg12[%c0_16, %c0_17] : memref<1x128xf32, #tpu.memory_space<vmem>>, vector<1x128xf32>
      %25 = arith.addf %24, %14 : vector<1x128xf32>
      %c0_18 = arith.constant 0 : index
      %c0_19 = arith.constant 0 : index
      %26 = vector.load %arg12[%c0_18, %c0_19] : memref<1x128xf32, #tpu.memory_space<vmem>>, vector<1x128xf32>
      tpu.vector_store %arg12[%c0_18, %c0_19], %25 {strides = array<i32>} : memref<1x128xf32, #tpu.memory_space<vmem>>, vector<1x128xf32>,
    } else {
    }
    %c0_i32_14 = arith.constant 0 : i32
    %21 = arith.cmpi eq, %arg1, %c0_i32_14 : i32
    %22 = arith.extui %21 : i1 to i32
    %c0_i32_15 = arith.constant 0 : i32
    %23 = arith.cmpi ne, %22, %c0_i32_15 : i32
    scf.if %23 {
      %c0_16 = arith.constant 0 : index
      %c0_17 = arith.constant 0 : index
      %24 = vector.load %arg12[%c0_16, %c0_17] : memref<1x128xf32, #tpu.memory_space<vmem>>, vector<1x128xf32>
      %cst_18 = arith.constant 1.562500e-02 : f32
      %25 = vector.broadcast %cst_18 : f32 to vector<1x128xf32>
      %26 = arith.mulf %24, %25 : vector<1x128xf32>
      %27 = arith.truncf %26 : vector<1x128xf32> to vector<1x128xbf16>
      %c0_19 = arith.constant 0 : index
      %c0_20 = arith.constant 0 : index
      %28 = vector.load %arg5[%c0_19, %c0_20] : memref<128x64xbf16, #tpu.memory_space<vmem>>, vector<128x64xbf16>
      %cst_21 = arith.constant dense<0.000000e+00> : vector<1x64xf32>
      %29 = tpu.matmul %27, %28, %cst_21 {dimension_numbers = #tpu.dot_dimension_numbers<[1], [0], [0], [1], [0, 0, 1, 1], [], []>} : vector<1x128xbf16>, vector<128x64xbf16>, vector<1x64xf32> -> vector<1x64xf32>
      %c0_22 = arith.constant 0 : index
      %c0_23 = arith.constant 0 : index
      %30 = vector.load %arg6[%c0_22, %c0_23] : memref<1x64xf32, #tpu.memory_space<vmem>>, vector<1x64xf32>
      %31 = arith.mulf %29, %30 : vector<1x64xf32>
      %c0_24 = arith.constant 0 : index
      %c0_25 = arith.constant 0 : index
      %32 = vector.load %arg7[%c0_24, %c0_25] : memref<1x64xf32, #tpu.memory_space<vmem>>, vector<1x64xf32>
      %33 = arith.addf %31, %32 : vector<1x64xf32>
      %cst_26 = arith.constant 0.000000e+00 : f32
      %34 = vector.broadcast %cst_26 : f32 to vector<1x64xf32>
      %35 = arith.maximumf %33, %34 : vector<1x64xf32>
      %36 = arith.truncf %35 : vector<1x64xf32> to vector<1x64xbf16>
      %c0_27 = arith.constant 0 : index
      %c0_28 = arith.constant 0 : index
      %37 = vector.load %arg8[%c0_27, %c0_28] : memref<64x8xbf16, #tpu.memory_space<vmem>>, vector<64x8xbf16>
      %cst_29 = arith.constant dense<0.000000e+00> : vector<1x8xf32>
      %38 = tpu.matmul %36, %37, %cst_29 {dimension_numbers = #tpu.dot_dimension_numbers<[1], [0], [0], [1], [0, 0, 1, 1], [], []>} : vector<1x64xbf16>, vector<64x8xbf16>, vector<1x8xf32> -> vector<1x8xf32>
      %c0_30 = arith.constant 0 : index
      %c0_31 = arith.constant 0 : index
      %39 = vector.load %arg9[%c0_30, %c0_31] : memref<1x8xf32, #tpu.memory_space<vmem>>, vector<1x8xf32>
      %40 = arith.addf %38, %39 : vector<1x8xf32>
      %c0_32 = arith.constant 0 : index
      %c0_33 = arith.constant 0 : index
      %c0_34 = arith.constant 0 : index
      %41 = vector.load %arg11[%c0_32, %c0_33, %c0_34] : memref<1x1x8xf32, #tpu.memory_space<vmem>>, vector<1x1x8xf32>
      %42 = vector.shape_cast %41 : vector<1x1x8xf32> to vector<1x8xf32>
      %43 = vector.shape_cast %40 : vector<1x8xf32> to vector<1x1x8xf32>
      tpu.vector_store %arg11[%c0_32, %c0_33, %c0_34], %43 {strides = array<i32>} : memref<1x1x8xf32, #tpu.memory_space<vmem>>, vector<1x1x8xf32>,
    } else {
    }
    return
  }
  func.func @transform_0(%arg0: i32, %arg1: i32) -> (i32, i32, i32) {
    %c0_i32 = arith.constant 0 : i32
    %c0_i32_0 = arith.constant 0 : i32
    return %arg0, %arg1, %c0_i32 : i32, i32, i32
  }
  func.func @transform_1(%arg0: i32, %arg1: i32) -> (i32, i32) {
    %c0_i32 = arith.constant 0 : i32
    %c0_i32_0 = arith.constant 0 : i32
    %c0_i32_1 = arith.constant 0 : i32
    return %c0_i32, %c0_i32_0 : i32, i32
  }
  func.func @transform_2(%arg0: i32, %arg1: i32) -> (i32, i32) {
    %c0_i32 = arith.constant 0 : i32
    %c0_i32_0 = arith.constant 0 : i32
    %c0_i32_1 = arith.constant 0 : i32
    return %c0_i32, %c0_i32_0 : i32, i32
  }
  func.func @transform_3(%arg0: i32, %arg1: i32) -> (i32, i32) {
    %c0_i32 = arith.constant 0 : i32
    %c0_i32_0 = arith.constant 0 : i32
    %c0_i32_1 = arith.constant 0 : i32
    return %c0_i32, %c0_i32_0 : i32, i32
  }
  func.func @transform_4(%arg0: i32, %arg1: i32) -> (i32, i32) {
    %c0_i32 = arith.constant 0 : i32
    %c0_i32_0 = arith.constant 0 : i32
    %c0_i32_1 = arith.constant 0 : i32
    return %c0_i32, %c0_i32_0 : i32, i32
  }
  func.func @transform_5(%arg0: i32, %arg1: i32) -> (i32, i32) {
    %c0_i32 = arith.constant 0 : i32
    %c0_i32_0 = arith.constant 0 : i32
    %c0_i32_1 = arith.constant 0 : i32
    return %c0_i32, %c0_i32_0 : i32, i32
  }
  func.func @transform_6(%arg0: i32, %arg1: i32) -> (i32, i32) {
    %c0_i32 = arith.constant 0 : i32
    %c0_i32_0 = arith.constant 0 : i32
    %c0_i32_1 = arith.constant 0 : i32
    return %c0_i32, %c0_i32_0 : i32, i32
  }
  func.func @transform_7(%arg0: i32, %arg1: i32) -> (i32, i32) {
    %c0_i32 = arith.constant 0 : i32
    %c0_i32_0 = arith.constant 0 : i32
    %c0_i32_1 = arith.constant 0 : i32
    return %c0_i32, %c0_i32_0 : i32, i32
  }
  func.func @transform_8(%arg0: i32, %arg1: i32) -> (i32, i32, i32) {
    %c0_i32 = arith.constant 0 : i32
    %c0_i32_0 = arith.constant 0 : i32
    return %arg0, %arg1, %c0_i32 : i32, i32, i32
  }
  func.func @transform_9(%arg0: i32, %arg1: i32) -> (i32, i32, i32) {
    %c0_i32 = arith.constant 0 : i32
    %c0_i32_0 = arith.constant 0 : i32
    %c0_i32_1 = arith.constant 0 : i32
    return %arg0, %c0_i32, %c0_i32_0 : i32, i32, i32
  }
}

module attributes {stable_mosaic.version = 11 : i64} {
  func.func @_heads_window_kernel(%arg0: i32, %arg1: i32, %arg2: memref<2x3xi32, #tpu.memory_space<smem>>, %arg3: memref<2x3xf32, #tpu.memory_space<smem>>, %arg4: memref<1x64x128xbf16, #tpu.memory_space<vmem>>, %arg5: memref<2x64xf32, #tpu.memory_space<vmem>>, %arg6: memref<128x128xbf16, #tpu.memory_space<vmem>>, %arg7: memref<1x128xf32, #tpu.memory_space<vmem>>, %arg8: memref<1x128xf32, #tpu.memory_space<vmem>>, %arg9: memref<8x128xbf16, #tpu.memory_space<vmem>>, %arg10: memref<8x1xf32, #tpu.memory_space<vmem>>, %arg11: memref<1x8x64xf32, #tpu.memory_space<vmem>>, %arg12: memref<1x5x8xf32, #tpu.memory_space<vmem>>, %arg13: memref<64x128xf32, #tpu.memory_space<vmem>>) attributes {dimension_semantics = [#tpu.dimension_semantics<parallel>, #tpu.dimension_semantics<arbitrary>], iteration_bounds = array<i64: 2, 3>, scalar_prefetch = 2 : i64, scratch_operands = 1 : i64, tpu.core_type = #tpu.core_type<tc>, window_params = [{transform_indices = @transform_0, window_bounds = array<i64: 1, 64, 128>}, {pipeline_mode = #tpu.pipeline_mode<synchronous>, transform_indices = @transform_1, window_bounds = array<i64: 2, 64>}, {pipeline_mode = #tpu.pipeline_mode<synchronous>, transform_indices = @transform_2, window_bounds = array<i64: 128, 128>}, {pipeline_mode = #tpu.pipeline_mode<synchronous>, transform_indices = @transform_3, window_bounds = array<i64: 1, 128>}, {pipeline_mode = #tpu.pipeline_mode<synchronous>, transform_indices = @transform_4, window_bounds = array<i64: 1, 128>}, {pipeline_mode = #tpu.pipeline_mode<synchronous>, transform_indices = @transform_5, window_bounds = array<i64: 8, 128>}, {pipeline_mode = #tpu.pipeline_mode<synchronous>, transform_indices = @transform_6, window_bounds = array<i64: 8, 1>}, {transform_indices = @transform_7, window_bounds = array<i64: 1, 8, 64>}, {transform_indices = @transform_8, window_bounds = array<i64: 1, 5, 8>}]} {
    %0 = arith.index_cast %arg0 : i32 to index
    %1 = arith.index_cast %arg1 : i32 to index
    %2 = memref.load %arg3[%0, %1] : memref<2x3xf32, #tpu.memory_space<smem>>
    %c0 = arith.constant 0 : index
    %c0_0 = arith.constant 0 : index
    %c0_1 = arith.constant 0 : index
    %3 = vector.load %arg4[%c0, %c0_0, %c0_1] : memref<1x64x128xbf16, #tpu.memory_space<vmem>>, vector<1x64x128xbf16>
    %4 = vector.shape_cast %3 : vector<1x64x128xbf16> to vector<64x128xbf16>
    %5 = arith.extf %4 : vector<64x128xbf16> to vector<64x128xf32>
    %6 = vector.broadcast %2 : f32 to vector<64x128xf32>
    %7 = arith.mulf %5, %6 : vector<64x128xf32>
    %c0_i32 = arith.constant 0 : i32
    %8 = arith.cmpi eq, %arg1, %c0_i32 : i32
    %9 = arith.extui %8 : i1 to i32
    %c0_i32_2 = arith.constant 0 : i32
    %10 = arith.cmpi ne, %9, %c0_i32_2 : i32
    scf.if %10 {
      %c0_6 = arith.constant 0 : index
      %c0_7 = arith.constant 0 : index
      %17 = vector.load %arg13[%c0_6, %c0_7] : memref<64x128xf32, #tpu.memory_space<vmem>>, vector<64x128xf32>
      tpu.vector_store %arg13[%c0_6, %c0_7], %7 {strides = array<i32>} : memref<64x128xf32, #tpu.memory_space<vmem>>, vector<64x128xf32>,
    } else {
    }
    %c0_i32_3 = arith.constant 0 : i32
    %11 = arith.cmpi sgt, %arg1, %c0_i32_3 : i32
    %12 = arith.extui %11 : i1 to i32
    %c0_i32_4 = arith.constant 0 : i32
    %13 = arith.cmpi ne, %12, %c0_i32_4 : i32
    scf.if %13 {
      %c0_6 = arith.constant 0 : index
      %c0_7 = arith.constant 0 : index
      %17 = vector.load %arg13[%c0_6, %c0_7] : memref<64x128xf32, #tpu.memory_space<vmem>>, vector<64x128xf32>
      %18 = arith.addf %17, %7 : vector<64x128xf32>
      %c0_8 = arith.constant 0 : index
      %c0_9 = arith.constant 0 : index
      %19 = vector.load %arg13[%c0_8, %c0_9] : memref<64x128xf32, #tpu.memory_space<vmem>>, vector<64x128xf32>
      tpu.vector_store %arg13[%c0_8, %c0_9], %18 {strides = array<i32>} : memref<64x128xf32, #tpu.memory_space<vmem>>, vector<64x128xf32>,
    } else {
    }
    %c2_i32 = arith.constant 2 : i32
    %14 = arith.cmpi eq, %arg1, %c2_i32 : i32
    %15 = arith.extui %14 : i1 to i32
    %c0_i32_5 = arith.constant 0 : i32
    %16 = arith.cmpi ne, %15, %c0_i32_5 : i32
    scf.if %16 {
      %c0_6 = arith.constant 0 : index
      %c0_7 = arith.constant 0 : index
      %17 = vector.load %arg13[%c0_6, %c0_7] : memref<64x128xf32, #tpu.memory_space<vmem>>, vector<64x128xf32>
      %18 = arith.truncf %17 : vector<64x128xf32> to vector<64x128xbf16>
      %c0_8 = arith.constant 0 : index
      %c0_9 = arith.constant 0 : index
      %19 = vector.load %arg6[%c0_8, %c0_9] : memref<128x128xbf16, #tpu.memory_space<vmem>>, vector<128x128xbf16>
      %cst = arith.constant dense<0.000000e+00> : vector<64x128xf32>
      %20 = tpu.matmul %18, %19, %cst {dimension_numbers = #tpu.dot_dimension_numbers<[1], [0], [0], [1], [0, 0, 1, 1], [], []>} : vector<64x128xbf16>, vector<128x128xbf16>, vector<64x128xf32> -> vector<64x128xf32>
      %c0_10 = arith.constant 0 : index
      %c0_11 = arith.constant 0 : index
      %21 = vector.load %arg7[%c0_10, %c0_11] : memref<1x128xf32, #tpu.memory_space<vmem>>, vector<1x128xf32>
      %22 = vector.broadcast %21 : vector<1x128xf32> to vector<64x128xf32>
      %23 = arith.mulf %20, %22 : vector<64x128xf32>
      %c0_12 = arith.constant 0 : index
      %c0_13 = arith.constant 0 : index
      %24 = vector.load %arg8[%c0_12, %c0_13] : memref<1x128xf32, #tpu.memory_space<vmem>>, vector<1x128xf32>
      %25 = vector.broadcast %24 : vector<1x128xf32> to vector<64x128xf32>
      %26 = arith.addf %23, %25 : vector<64x128xf32>
      %27 = arith.negf %26 : vector<64x128xf32>
      %28 = math.exp %27 : vector<64x128xf32>
      %cst_14 = arith.constant 1.000000e+00 : f32
      %29 = vector.broadcast %cst_14 : f32 to vector<64x128xf32>
      %30 = arith.addf %29, %28 : vector<64x128xf32>
      %31 = arith.divf %29, %30 : vector<64x128xf32>
      %32 = arith.mulf %26, %31 : vector<64x128xf32>
      %33 = arith.truncf %32 : vector<64x128xf32> to vector<64x128xbf16>
      %c0_15 = arith.constant 0 : index
      %c0_16 = arith.constant 0 : index
      %34 = vector.load %arg9[%c0_15, %c0_16] : memref<8x128xbf16, #tpu.memory_space<vmem>>, vector<8x128xbf16>
      %cst_17 = arith.constant dense<0.000000e+00> : vector<8x64xf32>
      %35 = tpu.matmul %34, %33, %cst_17 {dimension_numbers = #tpu.dot_dimension_numbers<[1], [1], [0], [0], [0, 0, 1, 0], [], []>} : vector<8x128xbf16>, vector<64x128xbf16>, vector<8x64xf32> -> vector<8x64xf32>
      %c0_18 = arith.constant 0 : index
      %c0_19 = arith.constant 0 : index
      %36 = vector.load %arg10[%c0_18, %c0_19] : memref<8x1xf32, #tpu.memory_space<vmem>>, vector<8x1xf32>
      %37 = vector.broadcast %36 : vector<8x1xf32> to vector<8x64xf32>
      %38 = arith.addf %35, %37 : vector<8x64xf32>
      %39 = vector.extract_strided_slice %38 {offsets = [0, 0], sizes = [5, 64], strides = [1, 1]} : vector<8x64xf32> to vector<5x64xf32>
      %40 = vector.extract_strided_slice %38 {offsets = [5, 0], sizes = [3, 64], strides = [1, 1]} : vector<8x64xf32> to vector<3x64xf32>
      %cst_20 = arith.constant dense<0xFF800000> : vector<5xf32>
      %41 = vector.multi_reduction <maximumf>, %39, %cst_20 [1] : vector<5x64xf32> to vector<5xf32>
      %42 = vector.shape_cast %41 : vector<5xf32> to vector<5x1xf32>
      %43 = vector.broadcast %42 : vector<5x1xf32> to vector<5x64xf32>
      %44 = arith.subf %39, %43 : vector<5x64xf32>
      %45 = math.exp %44 : vector<5x64xf32>
      %cst_21 = arith.constant dense<0.000000e+00> : vector<5xf32>
      %46 = vector.multi_reduction <add>, %45, %cst_21 [1] : vector<5x64xf32> to vector<5xf32>
      %47 = vector.shape_cast %46 : vector<5xf32> to vector<5x1xf32>
      %48 = tpu.reciprocal %47 {approx = true} : vector<5x1xf32> -> vector<5x1xf32>
      %49 = vector.broadcast %48 : vector<5x1xf32> to vector<5x64xf32>
      %50 = arith.mulf %45, %49 : vector<5x64xf32>
      %cst_22 = arith.constant dense<0xFF800000> : vector<64xf32>
      %51 = vector.multi_reduction <maximumf>, %40, %cst_22 [0] : vector<3x64xf32> to vector<64xf32>
      %52 = vector.shape_cast %51 : vector<64xf32> to vector<1x64xf32>
      %53 = vector.broadcast %52 : vector<1x64xf32> to vector<3x64xf32>
      %54 = arith.subf %40, %53 : vector<3x64xf32>
      %55 = math.exp %54 : vector<3x64xf32>
      %cst_23 = arith.constant dense<0.000000e+00> : vector<64xf32>
      %56 = vector.multi_reduction <add>, %55, %cst_23 [0] : vector<3x64xf32> to vector<64xf32>
      %57 = vector.shape_cast %56 : vector<64xf32> to vector<1x64xf32>
      %58 = tpu.reciprocal %57 {approx = true} : vector<1x64xf32> -> vector<1x64xf32>
      %59 = vector.broadcast %58 : vector<1x64xf32> to vector<3x64xf32>
      %60 = arith.mulf %55, %59 : vector<3x64xf32>
      %61 = tpu.concatenate %50, %60 in 0 : vector<5x64xf32>, vector<3x64xf32> -> vector<8x64xf32>
      %c0_24 = arith.constant 0 : index
      %c0_25 = arith.constant 0 : index
      %c0_26 = arith.constant 0 : index
      %62 = vector.load %arg11[%c0_24, %c0_25, %c0_26] : memref<1x8x64xf32, #tpu.memory_space<vmem>>, vector<1x8x64xf32>
      %63 = vector.shape_cast %62 : vector<1x8x64xf32> to vector<8x64xf32>
      %64 = vector.shape_cast %61 : vector<8x64xf32> to vector<1x8x64xf32>
      tpu.vector_store %arg11[%c0_24, %c0_25, %c0_26], %64 {strides = array<i32>} : memref<1x8x64xf32, #tpu.memory_space<vmem>>, vector<1x8x64xf32>,
      %c0_27 = arith.constant 0 : index
      %c0_28 = arith.constant 0 : index
      %65 = vector.load %arg5[%c0_27, %c0_28] : memref<2x64xf32, #tpu.memory_space<vmem>>, vector<1x64xf32>
      %c1 = arith.constant 1 : index
      %c0_29 = arith.constant 0 : index
      %66 = vector.load %arg5[%c1, %c0_29] : memref<2x64xf32, #tpu.memory_space<vmem>>, vector<1x64xf32>
      %67 = vector.broadcast %65 : vector<1x64xf32> to vector<5x64xf32>
      %68 = arith.mulf %50, %67 : vector<5x64xf32>
      %cst_30 = arith.constant dense<0.000000e+00> : vector<5xf32>
      %69 = vector.multi_reduction <add>, %68, %cst_30 [1] : vector<5x64xf32> to vector<5xf32>
      %70 = vector.shape_cast %69 : vector<5xf32> to vector<5x1xf32>
      %71 = vector.broadcast %66 : vector<1x64xf32> to vector<5x64xf32>
      %72 = arith.mulf %50, %71 : vector<5x64xf32>
      %cst_31 = arith.constant dense<0.000000e+00> : vector<5xf32>
      %73 = vector.multi_reduction <add>, %72, %cst_31 [1] : vector<5x64xf32> to vector<5xf32>
      %74 = vector.shape_cast %73 : vector<5xf32> to vector<5x1xf32>
      %cst_32 = arith.constant dense<0.000000e+00> : vector<5x3xf32>
      %75 = tpu.matmul %50, %60, %cst_32 {dimension_numbers = #tpu.dot_dimension_numbers<[1], [1], [0], [0], [0, 0, 1, 0], [], []>} : vector<5x64xf32>, vector<3x64xf32>, vector<5x3xf32> -> vector<5x3xf32>
      %cst_33 = arith.constant 0.000000e+00 : f32
      %76 = vector.broadcast %cst_33 : f32 to vector<5x3xf32>
      %77 = tpu.concatenate %70, %74, %75, %76 in 1 : vector<5x1xf32>, vector<5x1xf32>, vector<5x3xf32>, vector<5x3xf32> -> vector<5x8xf32>
      %c0_34 = arith.constant 0 : index
      %c0_35 = arith.constant 0 : index
      %c0_36 = arith.constant 0 : index
      %78 = vector.load %arg12[%c0_34, %c0_35, %c0_36] : memref<1x5x8xf32, #tpu.memory_space<vmem>>, vector<1x5x8xf32>
      %79 = vector.shape_cast %78 : vector<1x5x8xf32> to vector<5x8xf32>
      %80 = vector.shape_cast %77 : vector<5x8xf32> to vector<1x5x8xf32>
      tpu.vector_store %arg12[%c0_34, %c0_35, %c0_36], %80 {strides = array<i32>} : memref<1x5x8xf32, #tpu.memory_space<vmem>>, vector<1x5x8xf32>,
    } else {
    }
    return
  }
  func.func @transform_0(%arg0: i32, %arg1: i32, %arg2: memref<2x3xi32, #tpu.memory_space<smem>>, %arg3: memref<2x3xf32, #tpu.memory_space<smem>>) -> (i32, i32, i32) {
    %0 = arith.index_cast %arg0 : i32 to index
    %1 = arith.index_cast %arg1 : i32 to index
    %2 = memref.load %arg2[%0, %1] : memref<2x3xi32, #tpu.memory_space<smem>>
    %c0_i32 = arith.constant 0 : i32
    %c0_i32_0 = arith.constant 0 : i32
    %c0_i32_1 = arith.constant 0 : i32
    return %2, %c0_i32, %c0_i32_0 : i32, i32, i32
  }
  func.func @transform_1(%arg0: i32, %arg1: i32, %arg2: memref<2x3xi32, #tpu.memory_space<smem>>, %arg3: memref<2x3xf32, #tpu.memory_space<smem>>) -> (i32, i32) {
    %c0_i32 = arith.constant 0 : i32
    %c0_i32_0 = arith.constant 0 : i32
    %c0_i32_1 = arith.constant 0 : i32
    return %c0_i32, %c0_i32_0 : i32, i32
  }
  func.func @transform_2(%arg0: i32, %arg1: i32, %arg2: memref<2x3xi32, #tpu.memory_space<smem>>, %arg3: memref<2x3xf32, #tpu.memory_space<smem>>) -> (i32, i32) {
    %c0_i32 = arith.constant 0 : i32
    %c0_i32_0 = arith.constant 0 : i32
    %c0_i32_1 = arith.constant 0 : i32
    return %c0_i32, %c0_i32_0 : i32, i32
  }
  func.func @transform_3(%arg0: i32, %arg1: i32, %arg2: memref<2x3xi32, #tpu.memory_space<smem>>, %arg3: memref<2x3xf32, #tpu.memory_space<smem>>) -> (i32, i32) {
    %c0_i32 = arith.constant 0 : i32
    %c0_i32_0 = arith.constant 0 : i32
    %c0_i32_1 = arith.constant 0 : i32
    return %c0_i32, %c0_i32_0 : i32, i32
  }
  func.func @transform_4(%arg0: i32, %arg1: i32, %arg2: memref<2x3xi32, #tpu.memory_space<smem>>, %arg3: memref<2x3xf32, #tpu.memory_space<smem>>) -> (i32, i32) {
    %c0_i32 = arith.constant 0 : i32
    %c0_i32_0 = arith.constant 0 : i32
    %c0_i32_1 = arith.constant 0 : i32
    return %c0_i32, %c0_i32_0 : i32, i32
  }
  func.func @transform_5(%arg0: i32, %arg1: i32, %arg2: memref<2x3xi32, #tpu.memory_space<smem>>, %arg3: memref<2x3xf32, #tpu.memory_space<smem>>) -> (i32, i32) {
    %c0_i32 = arith.constant 0 : i32
    %c0_i32_0 = arith.constant 0 : i32
    %c0_i32_1 = arith.constant 0 : i32
    return %c0_i32, %c0_i32_0 : i32, i32
  }
  func.func @transform_6(%arg0: i32, %arg1: i32, %arg2: memref<2x3xi32, #tpu.memory_space<smem>>, %arg3: memref<2x3xf32, #tpu.memory_space<smem>>) -> (i32, i32) {
    %c0_i32 = arith.constant 0 : i32
    %c0_i32_0 = arith.constant 0 : i32
    %c0_i32_1 = arith.constant 0 : i32
    return %c0_i32, %c0_i32_0 : i32, i32
  }
  func.func @transform_7(%arg0: i32, %arg1: i32, %arg2: memref<2x3xi32, #tpu.memory_space<smem>>, %arg3: memref<2x3xf32, #tpu.memory_space<smem>>) -> (i32, i32, i32) {
    %c0_i32 = arith.constant 0 : i32
    %c0_i32_0 = arith.constant 0 : i32
    %c0_i32_1 = arith.constant 0 : i32
    return %arg0, %c0_i32, %c0_i32_0 : i32, i32, i32
  }
  func.func @transform_8(%arg0: i32, %arg1: i32, %arg2: memref<2x3xi32, #tpu.memory_space<smem>>, %arg3: memref<2x3xf32, #tpu.memory_space<smem>>) -> (i32, i32, i32) {
    %c0_i32 = arith.constant 0 : i32
    %c0_i32_0 = arith.constant 0 : i32
    %c0_i32_1 = arith.constant 0 : i32
    return %arg0, %c0_i32, %c0_i32_0 : i32, i32, i32
  }
}

</mosaic_0001>

<bundles_post_ra>
// kernel: _net_forward_jit.2
= control target key start
LH: loop header
LB: loop body
LE: loop exit
PB: predicated region body
PF: predicated region fallthrough
CT: control target
= control target key end

     0   :  { %s1020_s30 = smov 0   ;;  %s1022_s10 = smov 0   ;;  %s1127_s0 = inlined_call_operand.vmem [shape: bf16[6,64,48], index: 0, kind: input, shape index: {}]   ;;  %s1128_s1 = inlined_call_operand.vmem [shape: bf16[48,128], index: 1, kind: input, shape index: {}]   ;;  %s1129_s2 = inlined_call_operand.vmem [shape: f32[1,128], index: 2, kind: input, shape index: {}]   ;;  %s1130_s3 = inlined_call_operand.vmem [shape: bf16[128,64], index: 3, kind: input, shape index: {}]   ;;  %s1131_s4 = inlined_call_operand.vmem [shape: f32[1,64], index: 4, kind: input, shape index: {}]   ;;  %s1132_s5 = inlined_call_operand.vmem [shape: f32[1,64], index: 5, kind: input, shape index: {}]   ;;  %s1133_s6 = inlined_call_operand.vmem [shape: bf16[64,8], index: 6, kind: input, shape index: {}]   ;;  %s1134_s7 = inlined_call_operand.vmem [shape: f32[1,8], index: 7, kind: input, shape index: {}]   ;;  %s1135_s8 = inlined_call_operand.vmem [shape: bf16[6,64,128], index: 8, kind: output, shape index: {0}]   ;;  %s1136_s9 = inlined_call_operand.vmem [shape: f32[6,1,8], index: 9, kind: output, shape index: {1}]  }
   0x1   :  { %s1024_s11 = smov 0  }
   0x2 LB: > { %s32_s12 = sadd.s32 1, %s964_s10  ;;  %p786_p0 = scmp.ge.s32.totalorder %s968_s11, 1  ;;  %s968_s11 = sphi %s1024_s11, %s20_s11   ;;  %s964_s10 = sphi %s1022_s10, %s1138_s10   ;;  %s960_s30 = sphi %s1020_s30, %s1137_s30  }
   0x3   : > { %p34_p1 = scmp.ge.s32.totalorder %s32_s12, 6  ;;  %p311_p2 = scmp.lt.s32.totalorder %s968_s11, 7 }
   0x5   : > { %s1140_s12 = smov (%p34_p1, %s32_s12), 0  ;;  %p312_p3 = pnand %p786_p0, %p311_p2 }
   0x6   : > { %p359_p4 = scmp.lt.s32.totalorder (!%p312_p3), %s960_s30, 5 }
   0x7   : > { %315 = sbr.rel (%p312_p3) target bundleno = 486 (0x1e6), region = 52 }
   0xc   : > { %v882_v0 = vld [vmem:[%s1128_s1 + $0x10] sm:$0xff]  ;;  %v881_v1 = vld [vmem:[%s1128_s1 + $0x8] sm:$0xff]  ;;  %s1142_s30 = smov (!%p359_p4, %s960_s30), 5  ;;  %v880_v2 = vld [vmem:[%s1128_s1] sm:$0xff]  ;;  %vm438_vm0 = vcmask 392192   ;;  %vm651_vm1 = vcmask 523264  }
   0xd   : > { %456 = vmatpush.bf16.msra.mxu0 %v882_v0  ;;  %918 = vmatpush.bf16.msra.mxu3 %v882_v0  ;;  %s874_s17 = sshll.u32 %s1142_s30, 5  ;;  %v890_v7 = vld [vmem:[%s1130_s3 + $0x38] sm:$0xff]  ;;  %v889_v9 = vld [vmem:[%s1130_s3 + $0x30] sm:$0xff]  ;;  %v945_v10 = vld [vmem:[%s1129_s2] ss:$0 sm:$0xff]  ;;  %s380_s26 = scalar_lea.vmem %s1136_s9, %s1142_s30  ;;  %vm668_vm2 = vcmask 57344  }
   0xe   : > { %s366_s22 = scalar_lea.vmem %s1127_s0, %s874_s17  ;;  %599 = vmatpush.bf16.msra.mxu1 %v890_v7  ;;  %v888_v12 = vld [vmem:[%s1130_s3 + $0x28] sm:$0xff]  ;;  %v887_v16 = vld [vmem:[%s1130_s3 + $0x20] sm:$0xff]  ;;  %s1075_s19 = scalar_lea.vmem %s1135_s8, %s874_s17  ;;  %v886_v22 = vld [vmem:[%s1130_s3 + $0x18] sm:$0xff] }
   0xf   : > { %v876_v3 = vld [vmem:[%s366_s22] sm:$0xff]  ;;  %v878_v4 = vld [vmem:[%s366_s22 + $0x10] sm:$0xff]  ;;  %v877_v5 = vld [vmem:[%s366_s22 + $0x8] sm:$0xff] }
  0x10   : > { %v879_v6 = vld [vmem:[%s366_s22 + $0x18] sm:$0xff]  ;;  %v885_v27 = vld [vmem:[%s1130_s3 + $0x10] sm:$0xff]  ;;  %v884_v30 = vld [vmem:[%s1130_s3 + $0x8] sm:$0xff] }
  0x11   : > { %457 = vmatpush.bf16.msra.mxu0 %v881_v1  ;;  %919 = vmatpush.bf16.msra.mxu3 %v881_v1  ;;  %v883_v34 = vld [vmem:[%s1130_s3] sm:$0xff]  ;;  %v894_v45 = vld [vmem:[%s1133_s6 + $0x18] sm:$0xff]  ;;  %v893_v49 = vld [vmem:[%s1133_s6 + $0x10] sm:$0xff] }
  0x12   : > { %600 = vmatpush.bf16.msra.mxu1 %v889_v9  ;;  %659 = vmatpush.bf16.msra.mxu2 %v894_v45  ;;  %v892_v62 = vld [vmem:[%s1133_s6 + $0x8] sm:$0xff]  ;;  %v891_v63 = vld [vmem:[%s1133_s6] sm:$0xff] }
  0x13   : > { %v612_v0 = vld [vmem:[%s1131_s4] sm:$0x1] }
  0x15   : > { %458 = vmatpush.bf16.msra.mxu0 %v880_v2  ;;  %920 = vmatpush.bf16.msra.mxu3 %v880_v2  ;;  %v614_v2 = vld [vmem:[%s1132_s5] sm:$0x1] }
  0x16   : > { %601 = vmatpush.bf16.msra.mxu1 %v888_v12  ;;  %660 = vmatpush.bf16.msra.mxu2 %v893_v49 }
  0x18   : > { %819 = vmatmul.msk.bf16.vlgmr.msra.gmra.mxu0 %vm438_vm0, %v876_v3  ;;  %821 = vmatmul.msk.bf16.vlgmr.msra.gmra.mxu3 %vm438_vm0, %v878_v4 }
  0x1a   : > { %602 = vmatpush.bf16.msra.mxu1 %v887_v16  ;;  %661 = vmatpush.bf16.msra.mxu2 %v892_v62 }
  0x1e   : > { %603 = vmatpush.bf16.msra.mxu1 %v886_v22  ;;  %662 = vmatpush.bf16.msra.mxu2 %v891_v63 }
  0x22   : > { %604 = vmatpush.bf16.msra.mxu1 %v885_v27 }
  0x26   : > { %605 = vmatpush.bf16.msra.mxu1 %v884_v30 }
  0x28   : > { %820 = vmatmul.msk.bf16.gmra.mxu0 %vm438_vm0, %v877_v5  ;;  %822 = vmatmul.msk.bf16.gmra.mxu3 %vm438_vm0, %v879_v6 }
  0x2a   : > { %606 = vmatpush.bf16.msra.mxu1 %v883_v34 }
  0x95   : > { %v460_v8 = vpop.f32.mrf.mxu0 }
  0x96   : > { %v461_v13 = vadd.f32 %v945_v10, %v460_v8  ;;  %v626_v8 = vld [vmem:[%s1134_s7] sm:$0x1] }
  0x98   : > { %v480_v17 = vmax.f32 %v461_v13, 0.0 }
  0x9b   : > { %v470_v11 = vpop.f32.mrf.mxu3 }
  0x9c   : > { %v471_v19 = vadd.f32 %v945_v10, %v470_v11 }
  0x9d   : > { %v462_v14 = vpop.f32.mrf.mxu0 }
  0x9e   : > { %v463_v15 = vadd.f32 %v945_v10, %v462_v14  ;;  %v484_v25 = vmax.f32 %v471_v19, 0.0 }
  0xa0   : > { %v481_v18 = vmax.f32 %v463_v15, 0.0 }
  0xa2   : > { %v898_v20 = vpack.c.bf16 %v481_v18, %v480_v17  ;;  %v504_v35 = vadd.f32 %v481_v18, %v480_v17 }
  0xa3   : > { %v472_v21 = vpop.f32.mrf.mxu3 }
  0xa4   : > { %899 = vst [vmem:[%s1075_s19] sm:$0xff] %v898_v20   ;;  %v473_v23 = vadd.f32 %v945_v10, %v472_v21 }
  0xa5   : > { %v465_v24 = vpop.f32.mrf.mxu0 }
  0xa6   : > { %v485_v26 = vmax.f32 %v473_v23, 0.0  ;;  %v466_v29 = vadd.f32 %v945_v10, %v465_v24 }
  0xa8   : > { %v908_v28 = vpack.c.bf16 %v485_v26, %v484_v25  ;;  %v482_v32 = vmax.f32 %v466_v29, 0.0 }
  0xaa   : > { %916 = vst [vmem:[%s1075_s19 + $0x10] sm:$0xff] %v908_v28   ;;  %v505_v37 = vadd.f32 %v504_v35, %v482_v32 }
  0xab   : > { %v475_v31 = vpop.f32.mrf.mxu3 }
  0xac   : > { %v476_v39 = vadd.f32 %v945_v10, %v475_v31 }
  0xad   : > { %v467_v33 = vpop.f32.mrf.mxu0 }
  0xae   : > { %v468_v36 = vadd.f32 %v945_v10, %v467_v33  ;;  %v486_v46 = vmax.f32 %v476_v39, 0.0 }
  0xb0   : > { %v483_v38 = vmax.f32 %v468_v36, 0.0 }
  0xb2   : > { %v903_v40 = vpack.c.bf16 %v483_v38, %v482_v32  ;;  %v506_v41 = vadd.f32 %v505_v37, %v483_v38 }
  0xb3   : > { %v477_v42 = vpop.f32.mrf.mxu3 }
  0xb4   : > { %915 = vst [vmem:[%s1075_s19 + $0x8] sm:$0xff] %v903_v40   ;;  %v507_v43 = vadd.f32 %v506_v41, %v484_v25  ;;  %v478_v44 = vadd.f32 %v945_v10, %v477_v42 }
  0xb6   : > { %v487_v47 = vmax.f32 %v478_v44, 0.0  ;;  %v508_v48 = vadd.f32 %v507_v43, %v485_v26 }
  0xb8   : > { %v913_v50 = vpack.c.bf16 %v487_v47, %v486_v46  ;;  %v509_v51 = vadd.f32 %v508_v48, %v486_v46 }
  0xba   : > { %917 = vst [vmem:[%s1075_s19 + $0x18] sm:$0xff] %v913_v50   ;;  %v510_v52 = vadd.f32 %v509_v51, %v487_v47 }
  0xbc   : > { %v511_v53 = vrot.slane %v510_v52, 4 }
  0xbe   : > { %v512_v54 = vadd.f32 %v511_v53, %v510_v52 }
  0xc0   : > { %v513_v55 = vrot.slane %v512_v54, 2 }
  0xc2   : > { %v514_v56 = vadd.f32 %v513_v55, %v512_v54 }
  0xc4   : > { %v515_v57 = vrot.slane %v514_v56, 1 }
  0xc6   : > { %v516_v58 = vadd.f32 %v515_v57, %v514_v56 }
  0xc8   : > { %521 = vst [vmem:[#allocation2] sm:$0x1] %v516_v58 }
  0xcf   : > { %v532_v59 = vld [vmem:[#allocation2] sm:$0x1] }
  0xd0   : > { %v533_v60 = vmul.f32 0.015625, %v532_v59 }
  0xd2   : > { %v534_v61 = vpack.c.bf16 %v533_v60, %v533_v60 }
  0xd4   : > { %607 = vmatmul.bf16.vlgmr.msra.gmra.mxu1 %v534_v61 }
 0x151   : > { %v608_v1 = vpop.f32.mrf.mxu1 }
 0x152   : > { %v613_v3 = vmul.f32 %v612_v0, %v608_v1 }
 0x154   : > { %v615_v4 = vadd.f32 %v614_v2, %v613_v3 }
 0x156   : > { %v616_v5 = vmax.f32 %v615_v4, 0.0 }
 0x158   : > { %v617_v6 = vpack.c.bf16 %v616_v5, %v616_v5 }
 0x159   : > { %v610_v7 = vpop.f32.mrf.mxu1 }
 0x15a   : > { %871 = vmatmul.msk.bf16.vlgmr.msra.gmra.mxu2 %vm651_vm1, %v617_v6 }
 0x1dd   : > { %v664_v9 = vpop.f32.mrf.mxu2 }
 0x1de   : > { %v665_v10 = vadd.f32 %v664_v9, %v626_v8 }
 0x1e0   : > { %669 = vst.msk [vmem:[%s380_s26] sm:$0x1] %vm668_vm2, %v665_v10 }
 0x1e5   : > { %v666_v11 = vpop.f32.mrf.mxu2 }
 0x1e6 PF: > { %s20_s11 = sadd.s32 1, %s968_s11   ;;  %s1137_s30 = smov %s964_s10 }
 0x1e7   : > { %p17_p5 = scmp.ge.s32.totalorder %s20_s11, 8   ;;  %s1138_s10 = smov %s1140_s12 }
 0x1e9   :  { %19 = sbr.rel (!%p17_p5) target bundleno = 2 (0x2), region = 106 }

// kernel: _net_forward_jit.3
= control target key start
LH: loop header
LB: loop body
LE: loop exit
PB: predicated region body
PF: predicated region fallthrough
CT: control target
= control target key end

     0   :  { %s1234_s19 = smov [#allocation4]   ;;  %s1235_s20 = smov [#allocation5]   ;;  %s1583_s0 = inlined_call_operand.vmem [shape: s32[2,3], index: 0, kind: input, shape index: {}]   ;;  %s1584_s2 = inlined_call_operand.vmem [shape: bf16[6,64,128], index: 2, kind: input, shape index: {}]   ;;  %s1585_s3 = inlined_call_operand.vmem [shape: f32[2,64], index: 3, kind: input, shape index: {}]   ;;  %s1586_s4 = inlined_call_operand.vmem [shape: bf16[128,128], index: 4, kind: input, shape index: {}]   ;;  %s1587_s5 = inlined_call_operand.vmem [shape: f32[1,128], index: 5, kind: input, shape index: {}]   ;;  %s1588_s6 = inlined_call_operand.vmem [shape: f32[1,128], index: 6, kind: input, shape index: {}]   ;;  %s1589_s7 = inlined_call_operand.vmem [shape: bf16[8,128], index: 7, kind: input, shape index: {}]   ;;  %s1590_s8 = inlined_call_operand.vmem [shape: f32[8,1], index: 8, kind: input, shape index: {}]   ;;  %s1591_s9 = inlined_call_operand.vmem [shape: f32[2,8,64], index: 9, kind: output, shape index: {0}]   ;;  %s1592_s10 = inlined_call_operand.vmem [shape: f32[2,5,8], index: 10, kind: output, shape index: {1}]   ;;  %s1593_s1 = inlined_call_operand.vmem [shape: f32[2,3], index: 1, kind: input, shape index: {}]  }
   0x1   :  { %s17_s15 = sshll.u32 %s1583_s0, 4  ;;  %s22_s18 = sshll.u32 %s1593_s1, 4  ;;  %s18_s15 = int_to_ptr.vmem [resolvable:$true] %s17_s15  ;;  %s23_s18 = int_to_ptr.vmem [resolvable:$true] %s22_s18 }
   0x2   :  { %20 = dma.vmem_to_smem %s18_s15, 32, %s1234_s19, [#allocation3] }
   0x3   :  { %25 = dma.vmem_to_smem %s23_s18, 32, %s1235_s20, [#allocation3] }
   0x4   :  { %1212 = dma.done.wait [#allocation3], 64 }
   0x5   :  { %1213 = vsyncadd [#allocation3], 4294967232 }
   0x6   :  { %28 = sfence }
   0x7   :  { %s1299_s21 = smov 0   ;;  %s1301_s22 = smov 0  }
   0x8   :  { %s1303_s23 = smov 0   ;;  %s1305_s0 = smov 0  }
   0x9   :  { %s1307_s24 = smov 0  }
   0xa LB: > { %s43_s1 = sadd.s32 1, %s1224_s23  ;;  %s46_s25 = sadd.s32 1, %s1228_s0  ;;  %s1232_s24 = sphi %s1307_s24, %s34_s24   ;;  %s1228_s0 = sphi %s1305_s0, %s1611_s0   ;;  %s1224_s23 = sphi %s1303_s23, %s1610_s23   ;;  %s1220_s22 = sphi %s1301_s22, %s1609_s22   ;;  %s1216_s21 = sphi %s1299_s21, %s1608_s21  }
   0xb   : > { %p44_p0 = scmp.ge.s32.totalorder %s43_s1, 3  ;;  %p981_p1 = scmp.ge.s32.totalorder %s1232_s24, 1 }
   0xc   : > { %p324_p2 = scmp.lt.s32.totalorder %s1232_s24, 7 }
   0xd   : > { %s1613_s1 = smov (%p44_p0, %s43_s1), 0  ;;  %s1615_s25 = smov (!%p44_p0, %s46_s25), %s1228_s0 }
   0xe   : > { %p325_p3 = pnand %p981_p1, %p324_p2  ;;  %p48_p4 = scmp.ge.s32.totalorder %s1615_s25, 2 }
   0xf   : > { %s369_s26 = sshra.s32 (!%p325_p3), %s1216_s21, 7  ;;  %s374_s27 = sand.u32 (!%p325_p3), 127, %s1216_s21 }
  0x10   : > { %s1617_s25 = smov (%p48_p4, %s1615_s25), 0  ;;  %328 = sbr.rel (%p325_p3) target bundleno = 932 (0x3a4), region = 48 }
  0x11   : > { %s371_s28 = sadd.s32 (!%p325_p3), %s1220_s22, %s369_s26  ;;  %p390_p5 = scmp.lt.s32.totalorder (!%p325_p3), %s1220_s22, 1 }
  0x12   : > { %s982_s29 = sshll.u32 (!%p325_p3), %s371_s28, 7  ;;  %p988_p7 = scmp.ne.s32.totalorder (!%p325_p3), %s1216_s21, 0 }
  0x13   : > { %s375_s30 = sadd.s32 (!%p325_p3), %s982_s29, %s374_s27 }
  0x14   : > { %s376_s11 = sld [smem:[#allocation4 + %s375_s30]] (!%p325_p3) }
  0x15   : > { %s1619_s22 = smov (!%p390_p5, %s1220_s22), 1  ;;  %s406_s13 = sld [smem:[#allocation5 + %s375_s30]] }
  0x16   : > { %s985_s12 = sshll.u32 %s1619_s22, 3 }
  0x17   : > { %s1336_s16 = scalar_lea.vmem %s1591_s9, %s985_s12  ;;  %s1341_s19 = scalar_lea.vmem %s1592_s10, %s985_s12 }
  0x1a   : > { %p377_p6 = scmp.lt.s32.totalorder %s376_s11, 5 }
  0x1b   : > { %v423_v3 = vstv %s406_s13 }
  0x1c   : > { %s1621_s11 = smov (!%p377_p6, %s376_s11), 5 }
  0x1d   : > { %s1035_s20 = sshll.u32 %s1621_s11, 5 }
  0x1e   : > { %s381_s27 = scalar_lea.vmem %s1584_s2, %s1035_s20 }
  0x1f   : > { %v1045_v0 = vld [vmem:[%s381_s27] sm:$0xff]   ;;  %v1060_v1 = vld [vmem:[%s381_s27 + $0x8] sm:$0xff]   ;;  %v1061_v2 = vld [vmem:[%s381_s27 + $0x10] sm:$0xff]   ;;  %435 = sbr.rel (%p988_p7) target bundleno = 44 (0x2c), region = 52 }
  0x20   : > { %v1046_v4 = vunpack.c.l.bf16 %v1045_v0  ;;  %v1047_v5 = vunpack.c.h.bf16 %v1045_v0  ;;  %v1050_v6 = vunpack.c.l.bf16 %v1060_v1  ;;  %v1051_v7 = vunpack.c.h.bf16 %v1060_v1  ;;  %v1062_v8 = vld [vmem:[%s381_s27 + $0x18] sm:$0xff]  }
  0x21   : > { %v1054_v9 = vunpack.c.l.bf16 %v1061_v2  ;;  %v1055_v10 = vunpack.c.h.bf16 %v1061_v2  ;;  %v1058_v11 = vunpack.c.l.bf16 %v1062_v8  ;;  %v1059_v12 = vunpack.c.h.bf16 %v1062_v8 }
  0x22   : > { %v424_v13 = vmul.f32 %v1046_v4, %v423_v3  ;;  %v425_v14 = vmul.f32 %v1047_v5, %v423_v3  ;;  %v426_v15 = vmul.f32 %v1050_v6, %v423_v3  ;;  %v427_v16 = vmul.f32 %v1051_v7, %v423_v3 }
  0x23   : > { %v428_v17 = vmul.f32 %v1054_v9, %v423_v3  ;;  %v429_v18 = vmul.f32 %v1055_v10, %v423_v3  ;;  %v430_v19 = vmul.f32 %v1058_v11, %v423_v3  ;;  %v431_v20 = vmul.f32 %v1059_v12, %v423_v3 }
  0x24   : > { %436 = vst [vmem:[#allocation2 + $0x30] sm:$0xff] %v424_v13 }
  0x25   : > { %437 = vst [vmem:[#allocation2] sm:$0xff] %v425_v14 }
  0x26   : > { %438 = vst [vmem:[#allocation2 + $0x18] sm:$0xff] %v426_v15 }
  0x27   : > { %439 = vst [vmem:[#allocation2 + $0x10] sm:$0xff] %v427_v16 }
  0x28   : > { %440 = vst [vmem:[#allocation2 + $0x8] sm:$0xff] %v428_v17 }
  0x29   : > { %441 = vst [vmem:[#allocation2 + $0x20] sm:$0xff] %v429_v18 }
  0x2a   : > { %442 = vst [vmem:[#allocation2 + $0x28] sm:$0xff] %v430_v19 }
  0x2b   : > { %443 = vst [vmem:[#allocation2 + $0x38] sm:$0xff] %v431_v20 }
  0x2c PF: > { %p989_p8 = scmp.le.s32.totalorder %s1216_s21, 0 }
  0x2e   : > { %447 = sbr.rel (%p989_p8) target bundleno = 62 (0x3e), region = 56 }
  0x33   : > { %v448_v21 = vld [vmem:[#allocation2 + $0x30] sm:$0xff]  ;;  %v449_v22 = vld [vmem:[#allocation2] sm:$0xff]  ;;  %v450_v23 = vld [vmem:[#allocation2 + $0x18] sm:$0xff] }
  0x34   : > { %v456_v24 = vadd.f32 %v448_v21, %v424_v13  ;;  %v457_v25 = vadd.f32 %v449_v22, %v425_v14  ;;  %v458_v26 = vadd.f32 %v450_v23, %v426_v15  ;;  %v451_v27 = vld [vmem:[#allocation2 + $0x10] sm:$0xff]  ;;  %v452_v28 = vld [vmem:[#allocation2 + $0x8] sm:$0xff]  ;;  %v453_v29 = vld [vmem:[#allocation2 + $0x20] sm:$0xff] }
  0x35   : > { %v459_v30 = vadd.f32 %v451_v27, %v427_v16  ;;  %v454_v31 = vld [vmem:[#allocation2 + $0x28] sm:$0xff]  ;;  %v460_v32 = vadd.f32 %v452_v28, %v428_v17  ;;  %v455_v33 = vld [vmem:[#allocation2 + $0x38] sm:$0xff]  ;;  %v461_v34 = vadd.f32 %v453_v29, %v429_v18 }
  0x36   : > { %464 = vst [vmem:[#allocation2 + $0x30] sm:$0xff] %v456_v24  ;;  %v462_v35 = vadd.f32 %v454_v31, %v430_v19  ;;  %v463_v36 = vadd.f32 %v455_v33, %v431_v20 }
  0x37   : > { %465 = vst [vmem:[#allocation2] sm:$0xff] %v457_v25 }
  0x38   : > { %466 = vst [vmem:[#allocation2 + $0x18] sm:$0xff] %v458_v26 }
  0x39   : > { %467 = vst [vmem:[#allocation2 + $0x10] sm:$0xff] %v459_v30 }
  0x3a   : > { %468 = vst [vmem:[#allocation2 + $0x8] sm:$0xff] %v460_v32 }
  0x3b   : > { %469 = vst [vmem:[#allocation2 + $0x20] sm:$0xff] %v461_v34 }
  0x3c   : > { %470 = vst [vmem:[#allocation2 + $0x28] sm:$0xff] %v462_v35 }
  0x3d   : > { %471 = vst [vmem:[#allocation2 + $0x38] sm:$0xff] %v463_v36 }
  0x3e PF: > { %p990_p9 = scmp.ne.s32.totalorder %s1216_s21, 2 }
  0x3f   : > { %s1237_s28 = smov (!%p990_p9), 2  }
  0x40   : > { %475 = sbr.rel (%p990_p9) target bundleno = 932 (0x3a4), region = 60 }
  0x45   : > { %v1043_v37 = vld [vmem:[%s1586_s4 + $0x38] sm:$0xff]  ;;  %v1042_v38 = vld [vmem:[%s1586_s4 + $0x30] sm:$0xff]  ;;  %v1041_v39 = vld [vmem:[%s1586_s4 + $0x28] sm:$0xff] }
  0x46   : > { %1063 = vmatpush.bf16.msra.mxu2 %v1043_v37  ;;  %1064 = vmatpush.bf16.msra.mxu3 %v1043_v37  ;;  %v1040_v40 = vld [vmem:[%s1586_s4 + $0x20] sm:$0xff]  ;;  %v1039_v41 = vld [vmem:[%s1586_s4 + $0x18] sm:$0xff]  ;;  %v1038_v42 = vld [vmem:[%s1586_s4 + $0x10] sm:$0xff] }
  0x47   : > { %552 = vmatpush.bf16.msra.mxu0 %v1043_v37  ;;  %v1037_v43 = vld [vmem:[%s1586_s4 + $0x8] sm:$0xff]  ;;  %v1036_v44 = vld [vmem:[%s1586_s4] sm:$0xff]  ;;  %v478_v45 = vld [vmem:[#allocation2 + $0x18] sm:$0xff] }
  0x48   : > { %v479_v46 = vld [vmem:[#allocation2 + $0x10] sm:$0xff]  ;;  %v480_v47 = vld [vmem:[#allocation2 + $0x8] sm:$0xff]  ;;  %v481_v48 = vld [vmem:[#allocation2 + $0x20] sm:$0xff] }
  0x49   : > { %v476_v49 = vld [vmem:[#allocation2 + $0x30] sm:$0xff]  ;;  %v477_v50 = vld [vmem:[#allocation2] sm:$0xff]  ;;  %v485_v51 = vpack.c.bf16 %v479_v46, %v478_v45  ;;  %v486_v52 = vpack.c.bf16 %v481_v48, %v480_v47  ;;  %v482_v54 = vld [vmem:[#allocation2 + $0x28] sm:$0xff] }
  0x4a   : > { %1065 = vmatpush.bf16.msra.mxu2 %v1042_v38  ;;  %1066 = vmatpush.bf16.msra.mxu3 %v1042_v38  ;;  %v484_v53 = vpack.c.bf16 %v477_v50, %v476_v49  ;;  %v483_v55 = vld [vmem:[#allocation2 + $0x38] sm:$0xff]  ;;  %v1124_v59 = vld [vmem:[%s1587_s5] ss:$0 sm:$0xff] }
  0x4b   : > { %553 = vmatpush.bf16.msra.mxu0 %v1042_v38  ;;  %v487_v56 = vpack.c.bf16 %v483_v55, %v482_v54  ;;  %v1125_v60 = vld [vmem:[%s1588_s6] ss:$0 sm:$0xff] }
  0x4e   : > { %1067 = vmatpush.bf16.msra.mxu2 %v1041_v39  ;;  %1068 = vmatpush.bf16.msra.mxu3 %v1041_v39 }
  0x4f   : > { %554 = vmatpush.bf16.msra.mxu0 %v1041_v39 }
  0x52   : > { %1069 = vmatpush.bf16.msra.mxu2 %v1040_v40  ;;  %1070 = vmatpush.bf16.msra.mxu3 %v1040_v40 }
  0x53   : > { %555 = vmatpush.bf16.msra.mxu0 %v1040_v40 }
  0x56   : > { %1071 = vmatpush.bf16.msra.mxu2 %v1039_v41  ;;  %1072 = vmatpush.bf16.msra.mxu3 %v1039_v41 }
  0x57   : > { %556 = vmatpush.bf16.msra.mxu0 %v1039_v41 }
  0x5a   : > { %1073 = vmatpush.bf16.msra.mxu2 %v1038_v42  ;;  %1074 = vmatpush.bf16.msra.mxu3 %v1038_v42 }
  0x5b   : > { %557 = vmatpush.bf16.msra.mxu0 %v1038_v42 }
  0x5e   : > { %1075 = vmatpush.bf16.msra.mxu2 %v1037_v43  ;;  %1076 = vmatpush.bf16.msra.mxu3 %v1037_v43 }
  0x5f   : > { %558 = vmatpush.bf16.msra.mxu0 %v1037_v43 }
  0x62   : > { %1077 = vmatpush.bf16.msra.mxu2 %v1036_v44  ;;  %1078 = vmatpush.bf16.msra.mxu3 %v1036_v44 }
  0x63   : > { %559 = vmatpush.bf16.msra.mxu0 %v1036_v44 }
  0x65   : > { %565 = vmatmul.bf16.vlgmr.msra.gmra.mxu2 %v485_v51  ;;  %570 = vmatmul.bf16.vlgmr.msra.gmra.mxu3 %v486_v52 }
  0x66   : > { %560 = vmatmul.bf16.vlgmr.msra.gmra.mxu0 %v484_v53 }
  0x75   : > { %575 = vmatmul.bf16.gmra.mxu3 %v487_v56 }
  0xe3   : > { %v561_v63 = vpop.f32.mrf.mxu0 }
  0xe4   : > { %v585_v10 = vmul.f32 %v1124_v59, %v561_v63 }
  0xe6   : > { %v1392_v16 = vadd.f32 %v1125_v60, %v585_v10 }
  0xe8   : > { %v571_v57 = vpop.f32.mrf.mxu3  ;;  %v566_v58 = vpop.f32.mrf.mxu2  ;;  %v1023_v22 = vmul.f32 -1.442695, %v1392_v16 }
  0xe9   : > { %v589_v61 = vmul.f32 %v1124_v59, %v571_v57  ;;  %v587_v4 = vmul.f32 %v1124_v59, %v566_v58 }
  0xeb   : > { %v1381_v3 = vadd.f32 %v1125_v60, %v589_v61  ;;  %v1385_v9 = vadd.f32 %v1125_v60, %v587_v4  ;;  %v563_v13 = vpop.f32.mrf.mxu0 }
  0xec   : > { %v586_v19 = vmul.f32 %v1124_v59, %v563_v13 }
  0xed   : > { %v1027_v7 = vmul.f32 -1.442695, %v1381_v3  ;;  %v1025_v15 = vmul.f32 -1.442695, %v1385_v9 }
  0xee   : > { %v1399_v26 = vadd.f32 %v1125_v60, %v586_v19 }
  0xf0   : > { %v573_v62 = vpop.f32.mrf.mxu3  ;;  %v568_v1 = vpop.f32.mrf.mxu2  ;;  %v1024_v31 = vmul.f32 -1.442695, %v1399_v26 }
  0xf1   : > { %v590_v0 = vmul.f32 %v1124_v59, %v573_v62  ;;  %v588_v5 = vmul.f32 %v1124_v59, %v568_v1 }
  0xf3   : > { %v1379_v2 = vadd.f32 %v1125_v60, %v590_v0  ;;  %v1387_v12 = vadd.f32 %v1125_v60, %v588_v5 }
  0xf5   : > { %v1028_v6 = vmul.f32 -1.442695, %v1379_v2  ;;  %v1026_v18 = vmul.f32 -1.442695, %v1387_v12 }
  0xf7   : > { %1128 = vpow2.f32 %v1028_v6 }
  0xf8   : > { %v576_v8 = vpop.f32.mrf.mxu3  ;;  %1130 = vpow2.f32 %v1027_v7 }
  0xf9   : > { %v591_v11 = vmul.f32 %v1124_v59, %v576_v8 }
  0xfb   : > { %v1389_v14 = vadd.f32 %v1125_v60, %v591_v11 }
  0xfd   : > { %v1029_v17 = vmul.f32 -1.442695, %v1389_v14  ;;  %v1129_v20 = vpop.eup %1128 }
  0xfe   : > { %v1131_v24 = vpop.eup %1130  ;;  %v1397_v25 = vadd.f32 1.0, %v1129_v20 }
  0xff   : > { %1132 = vpow2.f32 %v1029_v17  ;;  %v1403_v29 = vadd.f32 1.0, %v1131_v24 }
 0x100   : > { %v578_v21 = vpop.f32.mrf.mxu3  ;;  %1134 = vpow2.f32 %v1025_v15  ;;  %vm717_vm11 = vweird.f32 %v1397_v25 }
 0x101   : > { %v592_v23 = vmul.f32 %v1124_v59, %v578_v21  ;;  %1136 = vpow2.f32 %v1026_v18  ;;  %vm702_vm2 = vweird.f32 %v1403_v29  ;;  %v706_v63 = vand.u32 2147483647, %v1403_v29 }
 0x102   : > { %1138 = vpow2.f32 %v1023_v22  ;;  %v708_v6 = vand.u32 2147483648, %v1403_v29 }
 0x103   : > { %v1401_v27 = vadd.f32 %v1125_v60, %v592_v23  ;;  %1140 = vrcp.f32 %v1397_v25  ;;  %v723_v23 = vand.u32 2147483648, %v1397_v25  ;;  %vm1460_vm13 = vcmp.eq.f32.partialorder %v706_v63, 8.507059e+37 }
 0x105   : > { %v1133_v28 = vpop.eup %1132  ;;  %v1030_v30 = vmul.f32 -1.442695, %v1401_v27 }
 0x106   : > { %v635_v32 = vadd.f32 1.0, %v1133_v28  ;;  %v1135_v33 = vpop.eup %1134 }
 0x107   : > { %1142 = vpow2.f32 %v1030_v30  ;;  %v1137_v34 = vpop.eup %1136  ;;  %v1409_v35 = vadd.f32 1.0, %v1135_v33  ;;  %v721_v30 = vand.u32 2147483647, %v1397_v25 }
 0x108   : > { %1144 = vrcp.f32 %v635_v32  ;;  %v1139_v36 = vpop.eup %1138  ;;  %v1411_v37 = vadd.f32 1.0, %v1137_v34  ;;  %v736_v58 = vand.u32 2147483647, %v635_v32  ;;  %v738_v59 = vand.u32 2147483648, %v635_v32 }
 0x109   : > { %1146 = vrcp.f32 %v1403_v29  ;;  %v1413_v38 = vpop.eup %1140  ;;  %v1421_v47 = vadd.f32 1.0, %v1139_v36  ;;  %vm732_vm1 = vweird.f32 %v635_v32  ;;  %vm672_vm9 = vweird.f32 %v1409_v35 }
 0x10a   : > { %1148 = vpow2.f32 %v1024_v31  ;;  %v713_v46 = vmul.f32 %v1413_v38, %v1397_v25  ;;  %vm737_vm6 = vcmp.eq.f32.partialorder %v736_v58, 8.507059e+37  ;;  %v739_v13 = vor.u32 1.1754944e-38, %v738_v59 }
 0x10b   : > { %1150 = vrcp.f32 %v1409_v35  ;;  %vm718_vm8 = vweird.f32 %v1413_v38  ;;  %v678_v58 = vand.u32 2147483648, %v1409_v35 }
 0x10c   : > { %1152 = vrcp.f32 %v1411_v37  ;;  %v714_v53 = vsub.f32 1.0, %v713_v46  ;;  %vm1464_vm14 = vmor %vm717_vm11, %vm718_vm8  ;;  %vm642_vm8 = vweird.f32 %v1421_v47 }
 0x10d   : > { %v1143_v39 = vpop.eup %1142 }
 0x10e   : > { %v1145_v40 = vpop.eup %1144  ;;  %v636_v41 = vadd.f32 1.0, %v1143_v39  ;;  %v715_v0 = vmul.f32 %v1413_v38, %v714_v53 }
 0x10f   : > { %v1416_v42 = vpop.eup %1146  ;;  %v728_v43 = vmul.f32 %v1145_v40, %v635_v32  ;;  %vm733_vm0 = vweird.f32 %v1145_v40 }
 0x110   : > { %v1149_v44 = vpop.eup %1148  ;;  %1154 = vrcp.f32 %v636_v41  ;;  %v698_v48 = vmul.f32 %v1416_v42, %v1403_v29  ;;  %vm1440_vm3 = vmor %vm732_vm1, %vm733_vm0  ;;  %v753_v4 = vand.u32 2147483648, %v636_v41  ;;  %vm703_vm4 = vweird.f32 %v1416_v42 }
 0x111   : > { %v729_v45 = vsub.f32 1.0, %v728_v43  ;;  %v1425_v49 = vadd.f32 1.0, %v1149_v44  ;;  %v1427_v51 = vpop.eup %1150  ;;  %1156 = vrcp.f32 %v1421_v47  ;;  %v751_v10 = vand.u32 2147483647, %v636_v41  ;;  %vm1482_vm15 = vmor %vm702_vm2, %vm703_vm4 }
 0x112   : > { %v1429_v52 = vpop.eup %1152  ;;  %v699_v55 = vsub.f32 1.0, %v698_v48  ;;  %v668_v60 = vmul.f32 %v1427_v51, %v1409_v35  ;;  %vm747_vm7 = vweird.f32 %v636_v41  ;;  %v716_v20 = vadd.f32 %v1413_v38, %v715_v0 }
 0x113   : > { %v730_v50 = vmul.f32 %v1145_v40, %v729_v45  ;;  %1158 = vrcp.f32 %v1425_v49  ;;  %v683_v61 = vmul.f32 %v1429_v52, %v1411_v37  ;;  %v754_v22 = vor.u32 1.1754944e-38, %v753_v4 }
 0x114   : > { %v700_v5 = vmul.f32 %v1416_v42, %v699_v55  ;;  %v669_v15 = vsub.f32 1.0, %v668_v60  ;;  %vm752_vm12 = vcmp.eq.f32.partialorder %v751_v10, 8.507059e+37  ;;  %v720_v25 = vsel %vm1464_vm14, %v1413_v38, %v716_v20 }
 0x115   : > { %v731_v56 = vadd.f32 %v1145_v40, %v730_v50  ;;  %v684_v17 = vsub.f32 1.0, %v683_v61  ;;  %v709_v44 = vor.u32 1.1754944e-38, %v708_v6  ;;  %v724_v45 = vor.u32 1.1754944e-38, %v723_v23  ;;  %v770_v50 = vld [vmem:[%s1590_s8] sm:$0xff] }
 0x116   : > { %v1155_v54 = vpop.eup %1154  ;;  %v701_v28 = vadd.f32 %v1416_v42, %v700_v5  ;;  %vm687_vm0 = vweird.f32 %v1411_v37  ;;  %vm722_vm1 = vcmp.eq.f32.partialorder %v721_v30, 8.507059e+37  ;;  %v693_v29 = vand.u32 2147483648, %v1411_v37 }
 0x117   : > { %v743_v57 = vmul.f32 %v1155_v54, %v636_v41  ;;  %v735_v7 = vsel %vm1440_vm3, %v1145_v40, %v731_v56  ;;  %vm748_vm5 = vweird.f32 %v1155_v54  ;;  %v1449_v11 = vpop.eup %1156  ;;  %v685_v41 = vmul.f32 %v1429_v52, %v684_v17 }
 0x118   : > { %v740_v21 = vsel %vm737_vm6, %v739_v13, %v735_v7  ;;  %vm749_vm10 = vmor %vm747_vm7, %vm748_vm5  ;;  %v638_v34 = vmul.f32 %v1449_v11, %v1421_v47  ;;  %v705_v38 = vsel %vm1482_vm15, %v1416_v42, %v701_v28  ;;  %vm688_vm3 = vweird.f32 %v1429_v52 }
 0x119   : > { %v744_v62 = vsub.f32 1.0, %v743_v57  ;;  %v1451_v18 = vpop.eup %1158  ;;  %v763_v39 = vmul.f32 %v740_v21, %v1389_v14  ;;  %v670_v14 = vmul.f32 %v1427_v51, %v669_v15  ;;  %v725_v46 = vsel %vm722_vm1, %v724_v45, %v720_v25  ;;  %vm1507_vm4 = vmor %vm687_vm0, %vm688_vm3 }
 0x11a   : > { %v653_v36 = vmul.f32 %v1451_v18, %v1425_v49  ;;  %v639_v48 = vsub.f32 1.0, %v638_v34  ;;  %vm673_vm2 = vweird.f32 %v1427_v51  ;;  %v686_v53 = vadd.f32 %v1429_v52, %v685_v41 }
 0x11b   : > { %v745_v8 = vmul.f32 %v1155_v54, %v744_v62  ;;  %v1236_v42 = vmov 0   ;;  %v710_v56 = vsel %vm1460_vm13, %v709_v44, %v705_v38  ;;  %v676_v57 = vand.u32 2147483647, %v1409_v35  ;;  %vm1515_vm5 = vmor %vm672_vm9, %vm673_vm2  ;;  %v1127_v62 = vld [vmem:[%s1585_s3] ss:$0 sm:$0xff] }
 0x11c   : > { %v654_v55 = vsub.f32 1.0, %v653_v36  ;;  %1123 = vset.pattern.permute.xlu0 %v1236_v42  ;;  %v762_v60 = vmul.f32 %v725_v46, %v1379_v2  ;;  %v671_v61 = vadd.f32 %v1427_v51, %v670_v14  ;;  %v694_v63 = vor.u32 1.1754944e-38, %v693_v29 }
 0x11d   : > { %v746_v19 = vadd.f32 %v1155_v54, %v745_v8  ;;  %773 = vperm.xlu0 %1123, %v770_v50   ;;  %v640_v0 = vmul.f32 %v1449_v11, %v639_v48  ;;  %v690_v1 = vsel %vm1507_vm4, %v1429_v52, %v686_v53  ;;  %vm1525_vm7 = vcmp.eq.f32.partialorder %v676_v57, 8.507059e+37 }
 0x11e   : > { %v655_v2 = vmul.f32 %v1451_v18, %v654_v55  ;;  %v679_v35 = vor.u32 1.1754944e-38, %v678_v58  ;;  %vm643_vm9 = vweird.f32 %v1449_v11  ;;  %vm658_vm11 = vweird.f32 %v1451_v18 }
 0x11f   : > { %v750_v24 = vsel %vm749_vm10, %v1155_v54, %v746_v19  ;;  %v691_v54 = vand.u32 2147483647, %v1411_v37  ;;  %v761_v37 = vmul.f32 %v710_v56, %v1381_v3  ;;  %v675_v3 = vsel %vm1515_vm5, %v1427_v51, %v671_v61  ;;  %v1126_v61 = vld [vmem:[%s1585_s3 + $0x1] ss:$0 sm:$0xff] }
 0x120   : > { %v755_v31 = vsel %vm752_vm12, %v754_v22, %v750_v24  ;;  %vm657_vm10 = vweird.f32 %v1425_v49  ;;  %v646_v6 = vand.u32 2147483647, %v1421_v47  ;;  %v648_v7 = vand.u32 2147483648, %v1421_v47  ;;  %vm644_vm12 = vmor %vm642_vm8, %vm643_vm9 }
 0x121   : > { %v764_v40 = vmul.f32 %v755_v31, %v1401_v27  ;;  %vm692_vm6 = vcmp.eq.f32.partialorder %v691_v54, 8.507059e+37  ;;  %v767_v5 = vpack.c.bf16 %v762_v60, %v761_v37  ;;  %v663_v8 = vand.u32 2147483648, %v1425_v49  ;;  %vm659_vm13 = vmor %vm657_vm10, %vm658_vm11 }
 0x122   : > { %v695_v52 = vsel %vm692_vm6, %v694_v63, %v690_v1  ;;  %v641_v10 = vadd.f32 %v1449_v11, %v640_v0  ;;  %v656_v13 = vadd.f32 %v1451_v18, %v655_v2  ;;  %v661_v15 = vand.u32 2147483647, %v1425_v49 }
 0x123   : > { %v768_v27 = vpack.c.bf16 %v764_v40, %v763_v39  ;;  %v680_v51 = vsel %vm1525_vm7, %v679_v35, %v675_v3  ;;  %v760_v17 = vmul.f32 %v695_v52, %v1387_v12  ;;  %vm647_vm14 = vcmp.eq.f32.partialorder %v646_v6, 8.507059e+37  ;;  %v769_v12 = vld [vmem:[%s1589_s7] sm:$0xf] }
 0x124   : > { %v649_v19 = vor.u32 1.1754944e-38, %v648_v7  ;;  %v664_v20 = vor.u32 1.1754944e-38, %v663_v8  ;;  %v759_v47 = vmul.f32 %v680_v51, %v1385_v9  ;;  %v645_v21 = vsel %vm644_vm12, %v1449_v11, %v641_v10 }
 0x125   : > { %780 = vmatpush.bf16.xpose.msra.mxu1 %v768_v27  ;;  %v660_v22 = vsel %vm659_vm13, %v1451_v18, %v656_v13  ;;  %vm662_vm15 = vcmp.eq.f32.partialorder %v661_v15, 8.507059e+37  ;;  %vm801_vm0 = vcmask 523269   ;;  %vm789_vm1 = vcmask 520192  }
 0x126   : > { %v766_v23 = vpack.c.bf16 %v760_v17, %v759_v47  ;;  %v650_v24 = vsel %vm647_vm14, %v649_v19, %v645_v21  ;;  %v665_v28 = vsel %vm662_vm15, %v664_v20, %v660_v22  ;;  %vm815_vm3 = vcmask 518144  }
 0x127   : > { %v757_v49 = vmul.f32 %v650_v24, %v1392_v16  ;;  %v758_v30 = vmul.f32 %v665_v28, %v1399_v26  ;;  %vm827_vm2 = vcmask 523264   ;;  %vm825_vm4 = vcmask 1044480  }
 0x128   : > { %vm872_vm5 = vcmask 7168   ;;  %vm874_vm6 = vcmask 15360   ;;  %vm876_vm7 = vcmask 39936   ;;  %vm878_vm8 = vcmask 61440  }
 0x129   : > { %v765_v31 = vpack.c.bf16 %v758_v30, %v757_v49 }
 0x12d   : > { %781 = vmatpush.bf16.xpose.msra.mxu1 %v767_v5 }
 0x135   : > { %782 = vmatpush.bf16.xpose.msra.mxu1 %v766_v23 }
 0x13d   : > { %783 = vmatpush.bf16.xpose.msra.mxu1 %v765_v31 }
 0x144   : > { %784 = vmatmul.bf16.vlgmr.msra.gmra.mxu1 %v769_v12 }
 0x18f   : > { %v774_v9 = vpop.permute.xlu0 %773 }
 0x1c1   : > { %v785_v11 = vpop.f32.mrf.mxu1 }
 0x1c2   : > { %v786_v18 = vadd.f32 %v785_v11, %v774_v9 }
 0x1c4   : > { %v802_v32 = vsel %vm801_vm0, %v786_v18, -inf  ;;  %v790_v33 = vsel %vm789_vm1, %v786_v18, -inf }
 0x1c5   : > { %v803_v34 = vrot.slane %v802_v32, 4  ;;  %791 = vmax.xlane.f32.xlu0 %v790_v33 }
 0x1c7   : > { %v804_v16 = vmax.f32 %v802_v32, %v803_v34 }
 0x1c9   : > { %v805_v36 = vrot.slane %v804_v16, 2  ;;  %v787_v26 = vpop.f32.mrf.mxu1 }
 0x1cb   : > { %v806_v39 = vmax.f32 %v804_v16, %v805_v36 }
 0x1cd   : > { %v807_v40 = vrot.slane %v806_v39, 1 }
 0x1cf   : > { %v808_v25 = vmax.f32 %v806_v39, %v807_v40 }
 0x1d1   : > { %v809_v41 = vsub.f32 %v786_v18, %v808_v25 }
 0x1d3   : > { %v810_v43 = vmul.f32 1.442695, %v809_v41 }
 0x1d5   : > { %1160 = vpow2.f32 %v810_v43 }
 0x1db   : > { %v1161_v44 = vpop.eup %1160 }
 0x1dc   : > { %v813_v45 = vrot.slane %v1161_v44, 5 }
 0x1de   : > { %v816_v14 = vsel %vm815_vm3, %v813_v45, 0.0 }
 0x1df   : > { %v817_v27 = vrot.slane %v816_v14, 4 }
 0x1e1   : > { %v818_v38 = vadd.f32 %v817_v27, %v816_v14 }
 0x1e3   : > { %v819_v46 = vrot.slane %v818_v38, 2 }
 0x1e5   : > { %v820_v29 = vadd.f32 %v819_v46, %v818_v38 }
 0x1e7   : > { %v821_v48 = vrot.slane %v820_v29, 1 }
 0x1e9   : > { %v822_v50 = vadd.f32 %v821_v48, %v820_v29 }
 0x1eb   : > { %1162 = vrcp.f32 %v822_v50 }
 0x1f1   : > { %v1163_v53 = vpop.eup %1162 }
 0x1f2   : > { %v824_v54 = vmul.f32 %v1163_v53, %v1161_v44 }
 0x1f4   : > { %v842_v55 = vrot.slane %v824_v54, 5 }
 0x1f6   : > { %1031 = vmatpush.xpose.msk.msrb.mxu2 %vm827_vm2, %v842_v55 }
 0x238   : > { %v792_v42 = vpop.xlane.xlu0 %791 }
 0x239   : > { %v793_v56 = vsub.f32 %v786_v18, %v792_v42 }
 0x23b   : > { %v794_v57 = vmul.f32 1.442695, %v793_v56 }
 0x23d   : > { %1164 = vpow2.f32 %v794_v57 }
 0x243   : > { %v1165_v58 = vpop.eup %1164 }
 0x244   : > { %v796_v59 = vsel %vm789_vm1, %v1165_v58, 0.0 }
 0x245   : > { %797 = vadd.xlane.f32.xlu1 %v796_v59 }
 0x2b8   : > { %v798_v60 = vpop.xlane.xlu1 %797 }
 0x2b9   : > { %1166 = vrcp.f32 %v798_v60 }
 0x2bf   : > { %v1167_v63 = vpop.eup %1166 }
 0x2c0   : > { %v800_v0 = vmul.f32 %v1167_v63, %v1165_v58 }
 0x2c2   : > { %v826_v37 = vsel %vm825_vm4, %v800_v0, %v824_v54  ;;  %1032 = vmatmul.msk.f32.vlgmr.msrb.gmra.mxu2 %vm827_vm2, %v800_v0  ;;  %v837_v1 = vmul.f32 %v1126_v61, %v800_v0  ;;  %v832_v2 = vmul.f32 %v1127_v62, %v800_v0 }
 0x2c3   : > { %828 = vst.msk [vmem:[%s1336_s16] sm:$0xff] %vm827_vm2, %v826_v37 }
 0x2c4   : > { %v838_v4 = vsel %vm789_vm1, %v837_v1, 0.0  ;;  %v833_v35 = vsel %vm789_vm1, %v832_v2, 0.0 }
 0x2c5   : > { %839 = vadd.xlane.f32.xlu2 %v838_v4  ;;  %834 = vadd.xlane.f32.xlu1 %v833_v35 }
 0x338   : > { %v840_v3 = vpop.xlane.xlu2 %839  ;;  %v835_v52 = vpop.xlane.xlu1 %834 }
 0x339   : > { %v873_v6 = vsel %vm872_vm5, %v835_v52, %v840_v3 }
 0x345   : > { %v865_v5 = vpop.f32.mrf.mxu2 }
 0x346   : > { %869 = vrot.lane.b32.xlu2 %v865_v5, %s1237_s28 }
 0x3a0   : > { %v870_v7 = vpop.permute.xlu2 %869 }
 0x3a1   : > { %v875_v8 = vsel %vm874_vm6, %v873_v6, %v870_v7 }
 0x3a2   : > { %v877_v10 = vsel %vm876_vm7, %v875_v8, 0.0 }
 0x3a3   : > { %879 = vst.msk [vmem:[%s1341_s19] sm:$0x1f] %vm878_vm8, %v877_v10 }
 0x3a4 PF: > { %s34_s24 = sadd.s32 1, %s1232_s24   ;;  %s1608_s21 = smov %s1224_s23 }
 0x3a5   : > { %p31_p10 = scmp.ge.s32.totalorder %s34_s24, 8   ;;  %s1609_s22 = smov %s1228_s0 }
 0x3a6   : > { %s1610_s23 = smov %s1613_s1  ;;  %s1611_s0 = smov %s1617_s25 }
 0x3a7   :  { %33 = sbr.rel (!%p31_p10) target bundleno = 10 (0xa), region = 102 }

</bundles_post_ra>
